<compile_context>
chip_gen: v6e
topology: v6e:2x2x1
jax: 0.10.0
libtpu: 0.0.40
codegen_flags: <defaults>
</compile_context>

<pallas_src>
import numpy as np
import jax
import jax.numpy as jnp
from jax.experimental import pallas as pl
from jax.experimental.pallas import tpu as pltpu

_EPS = 1e-5


def _make_residual_block_kernel(C, H, W, Bt, use_im2col):
    Wp = W + 2                  # padded row width
    Hp = H + 2
    L = H * Wp                  # acc-layout length: H rows of width Wp
    PADL = Hp * Wp + 2          # padded map + 2 slack lanes so every tap slice is in-bounds
    HW = H * W
    inv_n = 1.0 / float(HW)

    def kernel(x_ref, col_ref, w1_ref, b1_ref, w2_ref, b2_ref, o_ref, pad_ref, *im2):
        im2_ref = im2[0] if im2 else None

        # One-time scratch init (determinism only: these lanes can only feed the
        # junk columns that the wrapper crops).  On v7x megacore the core that
        # never executes step 0 skips this, which is equally harmless.
        @pl.when(pl.program_id(0) == 0)
        def _():
            pad_ref[...] = jnp.zeros_like(pad_ref)

        col = col_ref[...]              # (1, L) int32: column j within each Wp-row
        valid = col < W                 # (1, L): True on real output columns

        w1 = w1_ref[...]
        w2 = w2_ref[...]
        b1 = b1_ref[...]
        b2 = b2_ref[...]

        def reflect_pad(y):
            # Reflection-padded (Hp, Wp) map of `y` (acc layout) built in pad_ref
            # with contiguous slice stores plus one vector select for the two
            # border columns (no concatenate, no per-row relayout).
            pad_ref[:, Wp + 1:Wp + 1 + L] = y          # interior body lands in place
            sr1 = pad_ref[:, Wp:Wp + L]                # y[m-1]
            sl1 = pad_ref[:, Wp + 2:Wp + 2 + L]        # y[m+1]
            sr3 = pad_ref[:, Wp - 2:Wp - 2 + L]        # y[m-3]
            # Lanes of sr1/sr3 that are read before being written this call are
            # always masked out by the selects below (and were zeroed at step 0).
            rows = jnp.where(col == 0, sl1, jnp.where(col == W + 1, sr3, sr1))
            pad_ref[:, Wp:Wp + L] = rows                                           # rows 1..H
            pad_ref[:, 0:Wp] = rows[:, Wp:2 * Wp]                                  # top    = row 1
            pad_ref[:, (H + 1) * Wp:Hp * Wp] = rows[:, (H - 2) * Wp:(H - 1) * Wp]  # bottom = row H-2

        if use_im2col:
            def conv3x3(w_flat, b):
                # Materialize each shifted patch ONCE into the (9C, L) im2col
                # scratch (sublane-aligned stores since C % 8 == 0), then one
                # 9C-deep contraction feeds the MXU.
                for k in range(9):
                    ky, kx = divmod(k, 3)
                    im2_ref[k * C:(k + 1) * C, :] = (
                        pad_ref[:, ky * Wp + kx: ky * Wp + kx + L])
                return jnp.dot(w_flat, im2_ref[...],
                               preferred_element_type=jnp.float32) + b
        else:
            def conv3x3(w_taps, b):
                # 9 tap matmuls over contiguous lane slices of the padded map
                # (better than im2col at tiny C: no extra copy traffic).
                acc = jnp.zeros((C, L), jnp.float32)
                for k in range(9):
                    ky, kx = divmod(k, 3)
                    patch = pad_ref[:, ky * Wp + kx: ky * Wp + kx + L]   # (C, L)
                    acc = acc + jnp.dot(w_taps[k], patch,
                                        preferred_element_type=jnp.float32)
                return acc + b

        def inst_norm(y):
            # Two-pass masked stats (junk columns excluded), biased variance,
            # eps=1e-5 -> torch.nn.InstanceNorm2d defaults (affine=False).
            yv = jnp.where(valid, y, 0.0)
            mean = jnp.sum(yv, axis=1, keepdims=True) * inv_n
            d = jnp.where(valid, y - mean, 0.0)
            var = jnp.sum(d * d, axis=1, keepdims=True) * inv_n
            return (y - mean) * jax.lax.rsqrt(var + _EPS)

        for bb in range(Bt):            # Bt samples per grid step (static unroll)
            x = x_ref[bb]               # (C, L) f32 acc layout (junk cols are zero)
            # conv1 -> InstanceNorm -> ReLU
            reflect_pad(x)
            y1 = jnp.maximum(inst_norm(conv3x3(w1, b1)), 0.0)
            # ReflectionPad -> conv2 -> InstanceNorm
            reflect_pad(y1)
            y2 = inst_norm(conv3x3(w2, b2))
            # Residual add and ONE lane-dense (C, L) store; junk columns are
            # cropped in the wrapper.
            o_ref[bb] = (x + y2).astype(o_ref.dtype)

    return kernel, L, PADL


def _vmem_capacity_bytes():
    try:
        info = pltpu.get_tpu_info()
        cap = getattr(info, "vmem_capacity_bytes", None)
        if cap:
            return int(cap)
    except Exception:
        pass
    return 64 * 1024 * 1024   # conservative fallback = v7x per-core VMEM


def _pick_samples_per_step(B, per_sample_bytes):
    # Pack samples per grid step to amortize the ~0.35us step overhead, but
    # (a) keep >= 2 grid steps when B >= 2 so v7x megacore uses both cores and
    # (b) keep the per-step block modest.
    budget = 4 * 1024 * 1024
    bt = max(1, min(B, budget // max(per_sample_bytes, 1)))
    if B >= 2:
        bt = min(bt, max(B // 2, 1))
    bt = max(bt, 1)
    while B % bt:
        bt -= 1
    return max(bt, 1)


def residual_block(x, w1, b1, w2, b2):
    """x: (B, C, H, W) f32; w*: (C, C, 3, 3) PyTorch OIHW; b*: (C,)."""
    B, C, H, W = x.shape
    assert H >= 2 and W >= 2, "reflection pad of 1 needs H, W >= 2"
    Wp = W + 2
    L = H * Wp

    use_im2col = (C % 8 == 0) and (C >= 16)
    Bt = _pick_samples_per_step(B, per_sample_bytes=2 * 4 * C * L)
    kernel, L, PADL = _make_residual_block_kernel(C, H, W, Bt, use_im2col)

    # Single spatial HBM input: zero-right-pad each row to width Wp and flatten
    # ("acc layout"); the same buffer provides the residual inside the kernel.
    x_acc = jnp.pad(x, ((0, 0), (0, 0), (0, 0), (0, 2))).reshape(B, C, L)

    # Weights: per-tap (9, Cout, Cin) for the tap path, or (Cout, 9*Cin) with
    # rows ordered [tap-major, cin-minor] for the im2col path.  Bias as (C, 1).
    if use_im2col:
        def prep_w(w):
            return jnp.transpose(w, (0, 2, 3, 1)).reshape(C, 9 * C)
        w_spec = pl.BlockSpec((C, 9 * C), lambda b: (0, 0))
    else:
        def prep_w(w):
            return jnp.transpose(w, (2, 3, 0, 1)).reshape(9, C, C)
        w_spec = pl.BlockSpec((9, C, C), lambda b: (0, 0, 0))

    w1_p, w2_p = prep_w(w1), prep_w(w2)
    b1_c, b2_c = b1.reshape(C, 1), b2.reshape(C, 1)

    # Grid-invariant column-index map (1.2 KB): junk-column masking + border
    # selects.  Kept as a tiny input rather than an in-kernel iota % Wp to
    # avoid relying on vector integer mod lowering; DMA cost is negligible.
    col = jnp.asarray((np.arange(L, dtype=np.int32) % Wp).reshape(1, L))

    scratch_shapes = [pltpu.VMEM((C, PADL), jnp.float32)]
    if use_im2col:
        scratch_shapes.append(pltpu.VMEM((9 * C, L), jnp.float32))

    # Explicit VMEM budget, clamped to this generation's physical capacity.
    need = 4 * (2 * 2 * Bt * C * L                   # in + out blocks, double-buffered
                + 2 * L + 4 * 9 * C * C + 4 * C      # col / weights / bias (double-buffered)
                + C * PADL                           # reflection-pad scratch
                + (9 * C * L if use_im2col else 0)   # im2col scratch
                + 8 * C * L)                         # conv/norm temporaries headroom
    cap = _vmem_capacity_bytes()
    vmem_limit = int(min(max(4 * need, 32 * 1024 * 1024), cap - 8 * 1024 * 1024))
    vmem_limit = max(vmem_limit, 16 * 1024 * 1024)
    # TODO(synk): for production C*H*W, tile the grid over row bands with a
    # 1-row halo + accumulator InstanceNorm instead of whole-sample residency
    # (mandatory for v7x's 64 MiB VMEM at real style-transfer sizes).

    out = pl.pallas_call(
        kernel,
        out_shape=jax.ShapeDtypeStruct((B, C, L), x.dtype),
        grid_spec=pltpu.PrefetchScalarGridSpec(
            num_scalar_prefetch=0,
            grid=(B // Bt,),
            in_specs=[
                pl.BlockSpec((Bt, C, L), lambda b: (b, 0, 0)),   # x (acc layout)
                pl.BlockSpec((1, L), lambda b: (0, 0)),          # column-index map
                w_spec,                                          # conv1 weights
                pl.BlockSpec((C, 1), lambda b: (0, 0)),          # conv1 bias
                w_spec,                                          # conv2 weights
                pl.BlockSpec((C, 1), lambda b: (0, 0)),          # conv2 bias
            ],
            out_specs=pl.BlockSpec((Bt, C, L), lambda b: (b, 0, 0)),
            scratch_shapes=scratch_shapes,
        ),
        compiler_params=pltpu.CompilerParams(
            dimension_semantics=("parallel",),   # batch steps independent (v7x megacore)
            vmem_limit_bytes=vmem_limit,
        ),
    )(x_acc, col, w1_p, b1_c, w2_p, b2_c)

    # Crop the 2 junk columns per row (the in-kernel store stays lane-dense;
    # this is a cheap XLA reshape+slice).
    return out.reshape(B, C, H, Wp)[:, :, :, :W]


def reference(x, w1, b1, w2, b2):
    """Pure-JAX reference matching the PyTorch module semantics."""
    def conv(y, w, b):
        yp = jnp.pad(y, ((0, 0), (0, 0), (1, 1), (1, 1)), mode="reflect")
        out = jax.lax.conv_general_dilated(
            yp, w, (1, 1), "VALID",
            dimension_numbers=("NCHW", "OIHW", "NCHW"))
        return out + b[None, :, None, None]

    def inorm(y, eps=_EPS):
        m = jnp.mean(y, axis=(2, 3), keepdims=True)
        v = jnp.mean((y - m) ** 2, axis=(2, 3), keepdims=True)
        return (y - m) * jax.lax.rsqrt(v + eps)

    y = jnp.maximum(inorm(conv(x, w1, b1)), 0.0)
    y = inorm(conv(y, w2, b2))
    return x + y


if __name__ == "__main__":
    root = jax.random.PRNGKey(0)
    case_keys = jax.random.split(root, 2)

    def run_case(key, B, C, H, W):
        k_x, k_w1, k_b1, k_w2, k_b2 = jax.random.split(key, 5)
        x = jax.random.normal(k_x, (B, C, H, W), dtype=jnp.float32)
        # Deterministic synthetic parameters (Conv2d(in_features, in_features, 3)).
        w1 = 0.1 * jax.random.normal(k_w1, (C, C, 3, 3), dtype=jnp.float32)
        b1 = 0.1 * jax.random.normal(k_b1, (C,), dtype=jnp.float32)
        w2 = 0.1 * jax.random.normal(k_w2, (C, C, 3, 3), dtype=jnp.float32)
        b2 = 0.1 * jax.random.normal(k_b2, (C,), dtype=jnp.float32)

        out = jax.block_until_ready(residual_block(x, w1, b1, w2, b2))
        ref = jax.block_until_ready(reference(x, w1, b1, w2, b2))
        assert out.shape == (B, C, H, W) and out.dtype == jnp.float32
        assert jnp.allclose(out, ref, rtol=1e-3, atol=1e-3), (
            f"max abs err {jnp.max(jnp.abs(out - ref))} at B={B} C={C} H={H} W={W}")

    # Small demo shape (9-tap path) ...
    run_case(case_keys[0], B=2, C=4, H=16, W=16)
    # ... and a channel count that exercises the single-contraction im2col path.
    run_case(case_keys[1], B=2, C=16, H=16, W=16)

    print("KERNEL_OK")
</pallas_src>

<mosaic_0001>
module attributes {stable_mosaic.version = 11 : i64} {
  func.func @kernel(%arg0: i32, %arg1: memref<1x4x288xf32, #tpu.memory_space<vmem>>, %arg2: memref<1x288xi32, #tpu.memory_space<vmem>>, %arg3: memref<9x4x4xf32, #tpu.memory_space<vmem>>, %arg4: memref<4x1xf32, #tpu.memory_space<vmem>>, %arg5: memref<9x4x4xf32, #tpu.memory_space<vmem>>, %arg6: memref<4x1xf32, #tpu.memory_space<vmem>>, %arg7: memref<1x4x288xf32, #tpu.memory_space<vmem>>, %arg8: memref<4x326xf32, #tpu.memory_space<vmem>>) attributes {dimension_semantics = [#tpu.dimension_semantics<parallel>], iteration_bounds = array<i64: 2>, scalar_prefetch = 0 : i64, scratch_operands = 1 : i64, tpu.core_type = #tpu.core_type<tc>, window_params = [{transform_indices = @transform_0, window_bounds = array<i64: 1, 4, 288>}, {pipeline_mode = #tpu.pipeline_mode<synchronous>, transform_indices = @transform_1, window_bounds = array<i64: 1, 288>}, {pipeline_mode = #tpu.pipeline_mode<synchronous>, transform_indices = @transform_2, window_bounds = array<i64: 9, 4, 4>}, {pipeline_mode = #tpu.pipeline_mode<synchronous>, transform_indices = @transform_3, window_bounds = array<i64: 4, 1>}, {pipeline_mode = #tpu.pipeline_mode<synchronous>, transform_indices = @transform_4, window_bounds = array<i64: 9, 4, 4>}, {pipeline_mode = #tpu.pipeline_mode<synchronous>, transform_indices = @transform_5, window_bounds = array<i64: 4, 1>}, {transform_indices = @transform_6, window_bounds = array<i64: 1, 4, 288>}]} {
    %c0_i32 = arith.constant 0 : i32
    %0 = arith.cmpi eq, %arg0, %c0_i32 : i32
    %1 = arith.extui %0 : i1 to i32
    %c0_i32_0 = arith.constant 0 : i32
    %2 = arith.cmpi ne, %1, %c0_i32_0 : i32
    scf.if %2 {
      %cst_109 = arith.constant 0.000000e+00 : f32
      %204 = vector.broadcast %cst_109 : f32 to vector<4x326xf32>
      %c0_110 = arith.constant 0 : index
      %c0_111 = arith.constant 0 : index
      %205 = vector.load %arg8[%c0_110, %c0_111] : memref<4x326xf32, #tpu.memory_space<vmem>>, vector<4x326xf32>
      tpu.vector_store %arg8[%c0_110, %c0_111], %204 {strides = array<i32>} : memref<4x326xf32, #tpu.memory_space<vmem>>, vector<4x326xf32>,
    } else {
    }
    %c0 = arith.constant 0 : index
    %c0_1 = arith.constant 0 : index
    %3 = vector.load %arg2[%c0, %c0_1] : memref<1x288xi32, #tpu.memory_space<vmem>>, vector<1x288xi32>
    %c16_i32 = arith.constant 16 : i32
    %4 = vector.broadcast %c16_i32 : i32 to vector<1x288xi32>
    %5 = arith.cmpi slt, %3, %4 : vector<1x288xi32>
    %c0_2 = arith.constant 0 : index
    %c0_3 = arith.constant 0 : index
    %c0_4 = arith.constant 0 : index
    %6 = vector.load %arg3[%c0_2, %c0_3, %c0_4] : memref<9x4x4xf32, #tpu.memory_space<vmem>>, vector<9x4x4xf32>
    %c0_5 = arith.constant 0 : index
    %c0_6 = arith.constant 0 : index
    %c0_7 = arith.constant 0 : index
    %7 = vector.load %arg5[%c0_5, %c0_6, %c0_7] : memref<9x4x4xf32, #tpu.memory_space<vmem>>, vector<9x4x4xf32>
    %c0_8 = arith.constant 0 : index
    %c0_9 = arith.constant 0 : index
    %8 = vector.load %arg4[%c0_8, %c0_9] : memref<4x1xf32, #tpu.memory_space<vmem>>, vector<4x1xf32>
    %c0_10 = arith.constant 0 : index
    %c0_11 = arith.constant 0 : index
    %9 = vector.load %arg6[%c0_10, %c0_11] : memref<4x1xf32, #tpu.memory_space<vmem>>, vector<4x1xf32>
    %c0_12 = arith.constant 0 : index
    %c0_13 = arith.constant 0 : index
    %c0_14 = arith.constant 0 : index
    %10 = vector.load %arg1[%c0_12, %c0_13, %c0_14] : memref<1x4x288xf32, #tpu.memory_space<vmem>>, vector<1x4x288xf32>
    %11 = vector.shape_cast %10 : vector<1x4x288xf32> to vector<4x288xf32>
    %c0_15 = arith.constant 0 : index
    %c19 = arith.constant 19 : index
    %12 = vector.load %arg8[%c0_15, %c19] : memref<4x326xf32, #tpu.memory_space<vmem>>, vector<4x288xf32>
    tpu.vector_store %arg8[%c0_15, %c19], %11 {strides = array<i32>} : memref<4x326xf32, #tpu.memory_space<vmem>>, vector<4x288xf32>,
    %c0_16 = arith.constant 0 : index
    %c18 = arith.constant 18 : index
    %13 = vector.load %arg8[%c0_16, %c18] : memref<4x326xf32, #tpu.memory_space<vmem>>, vector<4x288xf32>
    %c0_17 = arith.constant 0 : index
    %c20 = arith.constant 20 : index
    %14 = vector.load %arg8[%c0_17, %c20] : memref<4x326xf32, #tpu.memory_space<vmem>>, vector<4x288xf32>
    %c0_18 = arith.constant 0 : index
    %c16 = arith.constant 16 : index
    %15 = vector.load %arg8[%c0_18, %c16] : memref<4x326xf32, #tpu.memory_space<vmem>>, vector<4x288xf32>
    %c0_i32_19 = arith.constant 0 : i32
    %16 = vector.broadcast %c0_i32_19 : i32 to vector<1x288xi32>
    %17 = arith.cmpi eq, %3, %16 : vector<1x288xi32>
    %c17_i32 = arith.constant 17 : i32
    %18 = vector.broadcast %c17_i32 : i32 to vector<1x288xi32>
    %19 = arith.cmpi eq, %3, %18 : vector<1x288xi32>
    %20 = vector.shape_cast %19 : vector<1x288xi1> to vector<1x288xi1>
    %21 = vector.broadcast %20 : vector<1x288xi1> to vector<4x288xi1>
    %22 = arith.select %21, %15, %13 : vector<4x288xi1>, vector<4x288xf32>
    %23 = vector.shape_cast %17 : vector<1x288xi1> to vector<1x288xi1>
    %24 = vector.broadcast %23 : vector<1x288xi1> to vector<4x288xi1>
    %25 = arith.select %24, %14, %22 : vector<4x288xi1>, vector<4x288xf32>
    %c0_20 = arith.constant 0 : index
    %c18_21 = arith.constant 18 : index
    %26 = vector.load %arg8[%c0_20, %c18_21] : memref<4x326xf32, #tpu.memory_space<vmem>>, vector<4x288xf32>
    tpu.vector_store %arg8[%c0_20, %c18_21], %25 {strides = array<i32>} : memref<4x326xf32, #tpu.memory_space<vmem>>, vector<4x288xf32>,
    %27 = vector.extract_strided_slice %25 {offsets = [0, 18], sizes = [4, 18], strides = [1, 1]} : vector<4x288xf32> to vector<4x18xf32>
    %c0_22 = arith.constant 0 : index
    %c0_23 = arith.constant 0 : index
    %28 = vector.load %arg8[%c0_22, %c0_23] : memref<4x326xf32, #tpu.memory_space<vmem>>, vector<4x18xf32>
    tpu.vector_store %arg8[%c0_22, %c0_23], %27 {strides = array<i32>} : memref<4x326xf32, #tpu.memory_space<vmem>>, vector<4x18xf32>,
    %29 = vector.extract_strided_slice %25 {offsets = [0, 252], sizes = [4, 18], strides = [1, 1]} : vector<4x288xf32> to vector<4x18xf32>
    %c0_24 = arith.constant 0 : index
    %c306 = arith.constant 306 : index
    %30 = vector.load %arg8[%c0_24, %c306] : memref<4x326xf32, #tpu.memory_space<vmem>>, vector<4x18xf32>
    tpu.vector_store %arg8[%c0_24, %c306], %29 {strides = array<i32>} : memref<4x326xf32, #tpu.memory_space<vmem>>, vector<4x18xf32>,
    %cst = arith.constant 0.000000e+00 : f32
    %31 = vector.broadcast %cst : f32 to vector<4x288xf32>
    %c0_25 = arith.constant 0 : index
    %c0_26 = arith.constant 0 : index
    %32 = vector.load %arg8[%c0_25, %c0_26] : memref<4x326xf32, #tpu.memory_space<vmem>>, vector<4x288xf32>
    %33 = vector.extract_strided_slice %6 {offsets = [0, 0, 0], sizes = [1, 4, 4], strides = [1, 1, 1]} : vector<9x4x4xf32> to vector<1x4x4xf32>
    %34 = vector.shape_cast %33 : vector<1x4x4xf32> to vector<4x4xf32>
    %cst_27 = arith.constant dense<0.000000e+00> : vector<4x288xf32>
    %35 = tpu.matmul %34, %32, %cst_27 {dimension_numbers = #tpu.dot_dimension_numbers<[1], [0], [0], [1], [0, 0, 1, 1], [], []>} : vector<4x4xf32>, vector<4x288xf32>, vector<4x288xf32> -> vector<4x288xf32>
    %36 = arith.addf %31, %35 : vector<4x288xf32>
    %c0_28 = arith.constant 0 : index
    %c1 = arith.constant 1 : index
    %37 = vector.load %arg8[%c0_28, %c1] : memref<4x326xf32, #tpu.memory_space<vmem>>, vector<4x288xf32>
    %38 = vector.extract_strided_slice %6 {offsets = [1, 0, 0], sizes = [1, 4, 4], strides = [1, 1, 1]} : vector<9x4x4xf32> to vector<1x4x4xf32>
    %39 = vector.shape_cast %38 : vector<1x4x4xf32> to vector<4x4xf32>
    %cst_29 = arith.constant dense<0.000000e+00> : vector<4x288xf32>
    %40 = tpu.matmul %39, %37, %cst_29 {dimension_numbers = #tpu.dot_dimension_numbers<[1], [0], [0], [1], [0, 0, 1, 1], [], []>} : vector<4x4xf32>, vector<4x288xf32>, vector<4x288xf32> -> vector<4x288xf32>
    %41 = arith.addf %36, %40 : vector<4x288xf32>
    %c0_30 = arith.constant 0 : index
    %c2 = arith.constant 2 : index
    %42 = vector.load %arg8[%c0_30, %c2] : memref<4x326xf32, #tpu.memory_space<vmem>>, vector<4x288xf32>
    %43 = vector.extract_strided_slice %6 {offsets = [2, 0, 0], sizes = [1, 4, 4], strides = [1, 1, 1]} : vector<9x4x4xf32> to vector<1x4x4xf32>
    %44 = vector.shape_cast %43 : vector<1x4x4xf32> to vector<4x4xf32>
    %cst_31 = arith.constant dense<0.000000e+00> : vector<4x288xf32>
    %45 = tpu.matmul %44, %42, %cst_31 {dimension_numbers = #tpu.dot_dimension_numbers<[1], [0], [0], [1], [0, 0, 1, 1], [], []>} : vector<4x4xf32>, vector<4x288xf32>, vector<4x288xf32> -> vector<4x288xf32>
    %46 = arith.addf %41, %45 : vector<4x288xf32>
    %c0_32 = arith.constant 0 : index
    %c18_33 = arith.constant 18 : index
    %47 = vector.load %arg8[%c0_32, %c18_33] : memref<4x326xf32, #tpu.memory_space<vmem>>, vector<4x288xf32>
    %48 = vector.extract_strided_slice %6 {offsets = [3, 0, 0], sizes = [1, 4, 4], strides = [1, 1, 1]} : vector<9x4x4xf32> to vector<1x4x4xf32>
    %49 = vector.shape_cast %48 : vector<1x4x4xf32> to vector<4x4xf32>
    %cst_34 = arith.constant dense<0.000000e+00> : vector<4x288xf32>
    %50 = tpu.matmul %49, %47, %cst_34 {dimension_numbers = #tpu.dot_dimension_numbers<[1], [0], [0], [1], [0, 0, 1, 1], [], []>} : vector<4x4xf32>, vector<4x288xf32>, vector<4x288xf32> -> vector<4x288xf32>
    %51 = arith.addf %46, %50 : vector<4x288xf32>
    %c0_35 = arith.constant 0 : index
    %c19_36 = arith.constant 19 : index
    %52 = vector.load %arg8[%c0_35, %c19_36] : memref<4x326xf32, #tpu.memory_space<vmem>>, vector<4x288xf32>
    %53 = vector.extract_strided_slice %6 {offsets = [4, 0, 0], sizes = [1, 4, 4], strides = [1, 1, 1]} : vector<9x4x4xf32> to vector<1x4x4xf32>
    %54 = vector.shape_cast %53 : vector<1x4x4xf32> to vector<4x4xf32>
    %cst_37 = arith.constant dense<0.000000e+00> : vector<4x288xf32>
    %55 = tpu.matmul %54, %52, %cst_37 {dimension_numbers = #tpu.dot_dimension_numbers<[1], [0], [0], [1], [0, 0, 1, 1], [], []>} : vector<4x4xf32>, vector<4x288xf32>, vector<4x288xf32> -> vector<4x288xf32>
    %56 = arith.addf %51, %55 : vector<4x288xf32>
    %c0_38 = arith.constant 0 : index
    %c20_39 = arith.constant 20 : index
    %57 = vector.load %arg8[%c0_38, %c20_39] : memref<4x326xf32, #tpu.memory_space<vmem>>, vector<4x288xf32>
    %58 = vector.extract_strided_slice %6 {offsets = [5, 0, 0], sizes = [1, 4, 4], strides = [1, 1, 1]} : vector<9x4x4xf32> to vector<1x4x4xf32>
    %59 = vector.shape_cast %58 : vector<1x4x4xf32> to vector<4x4xf32>
    %cst_40 = arith.constant dense<0.000000e+00> : vector<4x288xf32>
    %60 = tpu.matmul %59, %57, %cst_40 {dimension_numbers = #tpu.dot_dimension_numbers<[1], [0], [0], [1], [0, 0, 1, 1], [], []>} : vector<4x4xf32>, vector<4x288xf32>, vector<4x288xf32> -> vector<4x288xf32>
    %61 = arith.addf %56, %60 : vector<4x288xf32>
    %c0_41 = arith.constant 0 : index
    %c36 = arith.constant 36 : index
    %62 = vector.load %arg8[%c0_41, %c36] : memref<4x326xf32, #tpu.memory_space<vmem>>, vector<4x288xf32>
    %63 = vector.extract_strided_slice %6 {offsets = [6, 0, 0], sizes = [1, 4, 4], strides = [1, 1, 1]} : vector<9x4x4xf32> to vector<1x4x4xf32>
    %64 = vector.shape_cast %63 : vector<1x4x4xf32> to vector<4x4xf32>
    %cst_42 = arith.constant dense<0.000000e+00> : vector<4x288xf32>
    %65 = tpu.matmul %64, %62, %cst_42 {dimension_numbers = #tpu.dot_dimension_numbers<[1], [0], [0], [1], [0, 0, 1, 1], [], []>} : vector<4x4xf32>, vector<4x288xf32>, vector<4x288xf32> -> vector<4x288xf32>
    %66 = arith.addf %61, %65 : vector<4x288xf32>
    %c0_43 = arith.constant 0 : index
    %c37 = arith.constant 37 : index
    %67 = vector.load %arg8[%c0_43, %c37] : memref<4x326xf32, #tpu.memory_space<vmem>>, vector<4x288xf32>
    %68 = vector.extract_strided_slice %6 {offsets = [7, 0, 0], sizes = [1, 4, 4], strides = [1, 1, 1]} : vector<9x4x4xf32> to vector<1x4x4xf32>
    %69 = vector.shape_cast %68 : vector<1x4x4xf32> to vector<4x4xf32>
    %cst_44 = arith.constant dense<0.000000e+00> : vector<4x288xf32>
    %70 = tpu.matmul %69, %67, %cst_44 {dimension_numbers = #tpu.dot_dimension_numbers<[1], [0], [0], [1], [0, 0, 1, 1], [], []>} : vector<4x4xf32>, vector<4x288xf32>, vector<4x288xf32> -> vector<4x288xf32>
    %71 = arith.addf %66, %70 : vector<4x288xf32>
    %c0_45 = arith.constant 0 : index
    %c38 = arith.constant 38 : index
    %72 = vector.load %arg8[%c0_45, %c38] : memref<4x326xf32, #tpu.memory_space<vmem>>, vector<4x288xf32>
    %73 = vector.extract_strided_slice %6 {offsets = [8, 0, 0], sizes = [1, 4, 4], strides = [1, 1, 1]} : vector<9x4x4xf32> to vector<1x4x4xf32>
    %74 = vector.shape_cast %73 : vector<1x4x4xf32> to vector<4x4xf32>
    %cst_46 = arith.constant dense<0.000000e+00> : vector<4x288xf32>
    %75 = tpu.matmul %74, %72, %cst_46 {dimension_numbers = #tpu.dot_dimension_numbers<[1], [0], [0], [1], [0, 0, 1, 1], [], []>} : vector<4x4xf32>, vector<4x288xf32>, vector<4x288xf32> -> vector<4x288xf32>
    %76 = arith.addf %71, %75 : vector<4x288xf32>
    %77 = vector.broadcast %8 : vector<4x1xf32> to vector<4x288xf32>
    %78 = arith.addf %76, %77 : vector<4x288xf32>
    %cst_47 = arith.constant 0.000000e+00 : f32
    %79 = vector.shape_cast %5 : vector<1x288xi1> to vector<1x288xi1>
    %80 = vector.broadcast %79 : vector<1x288xi1> to vector<4x288xi1>
    %81 = vector.broadcast %cst_47 : f32 to vector<4x288xf32>
    %82 = arith.select %80, %78, %81 : vector<4x288xi1>, vector<4x288xf32>
    %cst_48 = arith.constant dense<0.000000e+00> : vector<4xf32>
    %83 = vector.multi_reduction <add>, %82, %cst_48 [1] : vector<4x288xf32> to vector<4xf32>
    %84 = vector.shape_cast %83 : vector<4xf32> to vector<4x1xf32>
    %cst_49 = arith.constant 3.906250e-03 : f32
    %85 = vector.broadcast %cst_49 : f32 to vector<4x1xf32>
    %86 = arith.mulf %84, %85 : vector<4x1xf32>
    %87 = vector.broadcast %86 : vector<4x1xf32> to vector<4x288xf32>
    %88 = arith.subf %78, %87 : vector<4x288xf32>
    %cst_50 = arith.constant 0.000000e+00 : f32
    %89 = vector.shape_cast %5 : vector<1x288xi1> to vector<1x288xi1>
    %90 = vector.broadcast %89 : vector<1x288xi1> to vector<4x288xi1>
    %91 = vector.broadcast %cst_50 : f32 to vector<4x288xf32>
    %92 = arith.select %90, %88, %91 : vector<4x288xi1>, vector<4x288xf32>
    %93 = arith.mulf %92, %92 : vector<4x288xf32>
    %cst_51 = arith.constant dense<0.000000e+00> : vector<4xf32>
    %94 = vector.multi_reduction <add>, %93, %cst_51 [1] : vector<4x288xf32> to vector<4xf32>
    %95 = vector.shape_cast %94 : vector<4xf32> to vector<4x1xf32>
    %cst_52 = arith.constant 3.906250e-03 : f32
    %96 = vector.broadcast %cst_52 : f32 to vector<4x1xf32>
    %97 = arith.mulf %95, %96 : vector<4x1xf32>
    %98 = vector.broadcast %86 : vector<4x1xf32> to vector<4x288xf32>
    %99 = arith.subf %78, %98 : vector<4x288xf32>
    %cst_53 = arith.constant 9.99999974E-6 : f32
    %100 = vector.broadcast %cst_53 : f32 to vector<4x1xf32>
    %101 = arith.addf %97, %100 : vector<4x1xf32>
    %102 = math.rsqrt %101 : vector<4x1xf32>
    %103 = vector.broadcast %102 : vector<4x1xf32> to vector<4x288xf32>
    %104 = arith.mulf %99, %103 : vector<4x288xf32>
    %cst_54 = arith.constant 0.000000e+00 : f32
    %105 = vector.broadcast %cst_54 : f32 to vector<4x288xf32>
    %106 = arith.maximumf %104, %105 : vector<4x288xf32>
    %c0_55 = arith.constant 0 : index
    %c19_56 = arith.constant 19 : index
    %107 = vector.load %arg8[%c0_55, %c19_56] : memref<4x326xf32, #tpu.memory_space<vmem>>, vector<4x288xf32>
    tpu.vector_store %arg8[%c0_55, %c19_56], %106 {strides = array<i32>} : memref<4x326xf32, #tpu.memory_space<vmem>>, vector<4x288xf32>,
    %c0_57 = arith.constant 0 : index
    %c18_58 = arith.constant 18 : index
    %108 = vector.load %arg8[%c0_57, %c18_58] : memref<4x326xf32, #tpu.memory_space<vmem>>, vector<4x288xf32>
    %c0_59 = arith.constant 0 : index
    %c20_60 = arith.constant 20 : index
    %109 = vector.load %arg8[%c0_59, %c20_60] : memref<4x326xf32, #tpu.memory_space<vmem>>, vector<4x288xf32>
    %c0_61 = arith.constant 0 : index
    %c16_62 = arith.constant 16 : index
    %110 = vector.load %arg8[%c0_61, %c16_62] : memref<4x326xf32, #tpu.memory_space<vmem>>, vector<4x288xf32>
    %c0_i32_63 = arith.constant 0 : i32
    %111 = vector.broadcast %c0_i32_63 : i32 to vector<1x288xi32>
    %112 = arith.cmpi eq, %3, %111 : vector<1x288xi32>
    %c17_i32_64 = arith.constant 17 : i32
    %113 = vector.broadcast %c17_i32_64 : i32 to vector<1x288xi32>
    %114 = arith.cmpi eq, %3, %113 : vector<1x288xi32>
    %115 = vector.shape_cast %114 : vector<1x288xi1> to vector<1x288xi1>
    %116 = vector.broadcast %115 : vector<1x288xi1> to vector<4x288xi1>
    %117 = arith.select %116, %110, %108 : vector<4x288xi1>, vector<4x288xf32>
    %118 = vector.shape_cast %112 : vector<1x288xi1> to vector<1x288xi1>
    %119 = vector.broadcast %118 : vector<1x288xi1> to vector<4x288xi1>
    %120 = arith.select %119, %109, %117 : vector<4x288xi1>, vector<4x288xf32>
    %c0_65 = arith.constant 0 : index
    %c18_66 = arith.constant 18 : index
    %121 = vector.load %arg8[%c0_65, %c18_66] : memref<4x326xf32, #tpu.memory_space<vmem>>, vector<4x288xf32>
    tpu.vector_store %arg8[%c0_65, %c18_66], %120 {strides = array<i32>} : memref<4x326xf32, #tpu.memory_space<vmem>>, vector<4x288xf32>,
    %122 = vector.extract_strided_slice %120 {offsets = [0, 18], sizes = [4, 18], strides = [1, 1]} : vector<4x288xf32> to vector<4x18xf32>
    %c0_67 = arith.constant 0 : index
    %c0_68 = arith.constant 0 : index
    %123 = vector.load %arg8[%c0_67, %c0_68] : memref<4x326xf32, #tpu.memory_space<vmem>>, vector<4x18xf32>
    tpu.vector_store %arg8[%c0_67, %c0_68], %122 {strides = array<i32>} : memref<4x326xf32, #tpu.memory_space<vmem>>, vector<4x18xf32>,
    %124 = vector.extract_strided_slice %120 {offsets = [0, 252], sizes = [4, 18], strides = [1, 1]} : vector<4x288xf32> to vector<4x18xf32>
    %c0_69 = arith.constant 0 : index
    %c306_70 = arith.constant 306 : index
    %125 = vector.load %arg8[%c0_69, %c306_70] : memref<4x326xf32, #tpu.memory_space<vmem>>, vector<4x18xf32>
    tpu.vector_store %arg8[%c0_69, %c306_70], %124 {strides = array<i32>} : memref<4x326xf32, #tpu.memory_space<vmem>>, vector<4x18xf32>,
    %cst_71 = arith.constant 0.000000e+00 : f32
    %126 = vector.broadcast %cst_71 : f32 to vector<4x288xf32>
    %c0_72 = arith.constant 0 : index
    %c0_73 = arith.constant 0 : index
    %127 = vector.load %arg8[%c0_72, %c0_73] : memref<4x326xf32, #tpu.memory_space<vmem>>, vector<4x288xf32>
    %128 = vector.extract_strided_slice %7 {offsets = [0, 0, 0], sizes = [1, 4, 4], strides = [1, 1, 1]} : vector<9x4x4xf32> to vector<1x4x4xf32>
    %129 = vector.shape_cast %128 : vector<1x4x4xf32> to vector<4x4xf32>
    %cst_74 = arith.constant dense<0.000000e+00> : vector<4x288xf32>
    %130 = tpu.matmul %129, %127, %cst_74 {dimension_numbers = #tpu.dot_dimension_numbers<[1], [0], [0], [1], [0, 0, 1, 1], [], []>} : vector<4x4xf32>, vector<4x288xf32>, vector<4x288xf32> -> vector<4x288xf32>
    %131 = arith.addf %126, %130 : vector<4x288xf32>
    %c0_75 = arith.constant 0 : index
    %c1_76 = arith.constant 1 : index
    %132 = vector.load %arg8[%c0_75, %c1_76] : memref<4x326xf32, #tpu.memory_space<vmem>>, vector<4x288xf32>
    %133 = vector.extract_strided_slice %7 {offsets = [1, 0, 0], sizes = [1, 4, 4], strides = [1, 1, 1]} : vector<9x4x4xf32> to vector<1x4x4xf32>
    %134 = vector.shape_cast %133 : vector<1x4x4xf32> to vector<4x4xf32>
    %cst_77 = arith.constant dense<0.000000e+00> : vector<4x288xf32>
    %135 = tpu.matmul %134, %132, %cst_77 {dimension_numbers = #tpu.dot_dimension_numbers<[1], [0], [0], [1], [0, 0, 1, 1], [], []>} : vector<4x4xf32>, vector<4x288xf32>, vector<4x288xf32> -> vector<4x288xf32>
    %136 = arith.addf %131, %135 : vector<4x288xf32>
    %c0_78 = arith.constant 0 : index
    %c2_79 = arith.constant 2 : index
    %137 = vector.load %arg8[%c0_78, %c2_79] : memref<4x326xf32, #tpu.memory_space<vmem>>, vector<4x288xf32>
    %138 = vector.extract_strided_slice %7 {offsets = [2, 0, 0], sizes = [1, 4, 4], strides = [1, 1, 1]} : vector<9x4x4xf32> to vector<1x4x4xf32>
    %139 = vector.shape_cast %138 : vector<1x4x4xf32> to vector<4x4xf32>
    %cst_80 = arith.constant dense<0.000000e+00> : vector<4x288xf32>
    %140 = tpu.matmul %139, %137, %cst_80 {dimension_numbers = #tpu.dot_dimension_numbers<[1], [0], [0], [1], [0, 0, 1, 1], [], []>} : vector<4x4xf32>, vector<4x288xf32>, vector<4x288xf32> -> vector<4x288xf32>
    %141 = arith.addf %136, %140 : vector<4x288xf32>
    %c0_81 = arith.constant 0 : index
    %c18_82 = arith.constant 18 : index
    %142 = vector.load %arg8[%c0_81, %c18_82] : memref<4x326xf32, #tpu.memory_space<vmem>>, vector<4x288xf32>
    %143 = vector.extract_strided_slice %7 {offsets = [3, 0, 0], sizes = [1, 4, 4], strides = [1, 1, 1]} : vector<9x4x4xf32> to vector<1x4x4xf32>
    %144 = vector.shape_cast %143 : vector<1x4x4xf32> to vector<4x4xf32>
    %cst_83 = arith.constant dense<0.000000e+00> : vector<4x288xf32>
    %145 = tpu.matmul %144, %142, %cst_83 {dimension_numbers = #tpu.dot_dimension_numbers<[1], [0], [0], [1], [0, 0, 1, 1], [], []>} : vector<4x4xf32>, vector<4x288xf32>, vector<4x288xf32> -> vector<4x288xf32>
    %146 = arith.addf %141, %145 : vector<4x288xf32>
    %c0_84 = arith.constant 0 : index
    %c19_85 = arith.constant 19 : index
    %147 = vector.load %arg8[%c0_84, %c19_85] : memref<4x326xf32, #tpu.memory_space<vmem>>, vector<4x288xf32>
    %148 = vector.extract_strided_slice %7 {offsets = [4, 0, 0], sizes = [1, 4, 4], strides = [1, 1, 1]} : vector<9x4x4xf32> to vector<1x4x4xf32>
    %149 = vector.shape_cast %148 : vector<1x4x4xf32> to vector<4x4xf32>
    %cst_86 = arith.constant dense<0.000000e+00> : vector<4x288xf32>
    %150 = tpu.matmul %149, %147, %cst_86 {dimension_numbers = #tpu.dot_dimension_numbers<[1], [0], [0], [1], [0, 0, 1, 1], [], []>} : vector<4x4xf32>, vector<4x288xf32>, vector<4x288xf32> -> vector<4x288xf32>
    %151 = arith.addf %146, %150 : vector<4x288xf32>
    %c0_87 = arith.constant 0 : index
    %c20_88 = arith.constant 20 : index
    %152 = vector.load %arg8[%c0_87, %c20_88] : memref<4x326xf32, #tpu.memory_space<vmem>>, vector<4x288xf32>
    %153 = vector.extract_strided_slice %7 {offsets = [5, 0, 0], sizes = [1, 4, 4], strides = [1, 1, 1]} : vector<9x4x4xf32> to vector<1x4x4xf32>
    %154 = vector.shape_cast %153 : vector<1x4x4xf32> to vector<4x4xf32>
    %cst_89 = arith.constant dense<0.000000e+00> : vector<4x288xf32>
    %155 = tpu.matmul %154, %152, %cst_89 {dimension_numbers = #tpu.dot_dimension_numbers<[1], [0], [0], [1], [0, 0, 1, 1], [], []>} : vector<4x4xf32>, vector<4x288xf32>, vector<4x288xf32> -> vector<4x288xf32>
    %156 = arith.addf %151, %155 : vector<4x288xf32>
    %c0_90 = arith.constant 0 : index
    %c36_91 = arith.constant 36 : index
    %157 = vector.load %arg8[%c0_90, %c36_91] : memref<4x326xf32, #tpu.memory_space<vmem>>, vector<4x288xf32>
    %158 = vector.extract_strided_slice %7 {offsets = [6, 0, 0], sizes = [1, 4, 4], strides = [1, 1, 1]} : vector<9x4x4xf32> to vector<1x4x4xf32>
    %159 = vector.shape_cast %158 : vector<1x4x4xf32> to vector<4x4xf32>
    %cst_92 = arith.constant dense<0.000000e+00> : vector<4x288xf32>
    %160 = tpu.matmul %159, %157, %cst_92 {dimension_numbers = #tpu.dot_dimension_numbers<[1], [0], [0], [1], [0, 0, 1, 1], [], []>} : vector<4x4xf32>, vector<4x288xf32>, vector<4x288xf32> -> vector<4x288xf32>
    %161 = arith.addf %156, %160 : vector<4x288xf32>
    %c0_93 = arith.constant 0 : index
    %c37_94 = arith.constant 37 : index
    %162 = vector.load %arg8[%c0_93, %c37_94] : memref<4x326xf32, #tpu.memory_space<vmem>>, vector<4x288xf32>
    %163 = vector.extract_strided_slice %7 {offsets = [7, 0, 0], sizes = [1, 4, 4], strides = [1, 1, 1]} : vector<9x4x4xf32> to vector<1x4x4xf32>
    %164 = vector.shape_cast %163 : vector<1x4x4xf32> to vector<4x4xf32>
    %cst_95 = arith.constant dense<0.000000e+00> : vector<4x288xf32>
    %165 = tpu.matmul %164, %162, %cst_95 {dimension_numbers = #tpu.dot_dimension_numbers<[1], [0], [0], [1], [0, 0, 1, 1], [], []>} : vector<4x4xf32>, vector<4x288xf32>, vector<4x288xf32> -> vector<4x288xf32>
    %166 = arith.addf %161, %165 : vector<4x288xf32>
    %c0_96 = arith.constant 0 : index
    %c38_97 = arith.constant 38 : index
    %167 = vector.load %arg8[%c0_96, %c38_97] : memref<4x326xf32, #tpu.memory_space<vmem>>, vector<4x288xf32>
    %168 = vector.extract_strided_slice %7 {offsets = [8, 0, 0], sizes = [1, 4, 4], strides = [1, 1, 1]} : vector<9x4x4xf32> to vector<1x4x4xf32>
    %169 = vector.shape_cast %168 : vector<1x4x4xf32> to vector<4x4xf32>
    %cst_98 = arith.constant dense<0.000000e+00> : vector<4x288xf32>
    %170 = tpu.matmul %169, %167, %cst_98 {dimension_numbers = #tpu.dot_dimension_numbers<[1], [0], [0], [1], [0, 0, 1, 1], [], []>} : vector<4x4xf32>, vector<4x288xf32>, vector<4x288xf32> -> vector<4x288xf32>
    %171 = arith.addf %166, %170 : vector<4x288xf32>
    %172 = vector.broadcast %9 : vector<4x1xf32> to vector<4x288xf32>
    %173 = arith.addf %171, %172 : vector<4x288xf32>
    %cst_99 = arith.constant 0.000000e+00 : f32
    %174 = vector.shape_cast %5 : vector<1x288xi1> to vector<1x288xi1>
    %175 = vector.broadcast %174 : vector<1x288xi1> to vector<4x288xi1>
    %176 = vector.broadcast %cst_99 : f32 to vector<4x288xf32>
    %177 = arith.select %175, %173, %176 : vector<4x288xi1>, vector<4x288xf32>
    %cst_100 = arith.constant dense<0.000000e+00> : vector<4xf32>
    %178 = vector.multi_reduction <add>, %177, %cst_100 [1] : vector<4x288xf32> to vector<4xf32>
    %179 = vector.shape_cast %178 : vector<4xf32> to vector<4x1xf32>
    %cst_101 = arith.constant 3.906250e-03 : f32
    %180 = vector.broadcast %cst_101 : f32 to vector<4x1xf32>
    %181 = arith.mulf %179, %180 : vector<4x1xf32>
    %182 = vector.broadcast %181 : vector<4x1xf32> to vector<4x288xf32>
    %183 = arith.subf %173, %182 : vector<4x288xf32>
    %cst_102 = arith.constant 0.000000e+00 : f32
    %184 = vector.shape_cast %5 : vector<1x288xi1> to vector<1x288xi1>
    %185 = vector.broadcast %184 : vector<1x288xi1> to vector<4x288xi1>
    %186 = vector.broadcast %cst_102 : f32 to vector<4x288xf32>
    %187 = arith.select %185, %183, %186 : vector<4x288xi1>, vector<4x288xf32>
    %188 = arith.mulf %187, %187 : vector<4x288xf32>
    %cst_103 = arith.constant dense<0.000000e+00> : vector<4xf32>
    %189 = vector.multi_reduction <add>, %188, %cst_103 [1] : vector<4x288xf32> to vector<4xf32>
    %190 = vector.shape_cast %189 : vector<4xf32> to vector<4x1xf32>
    %cst_104 = arith.constant 3.906250e-03 : f32
    %191 = vector.broadcast %cst_104 : f32 to vector<4x1xf32>
    %192 = arith.mulf %190, %191 : vector<4x1xf32>
    %193 = vector.broadcast %181 : vector<4x1xf32> to vector<4x288xf32>
    %194 = arith.subf %173, %193 : vector<4x288xf32>
    %cst_105 = arith.constant 9.99999974E-6 : f32
    %195 = vector.broadcast %cst_105 : f32 to vector<4x1xf32>
    %196 = arith.addf %192, %195 : vector<4x1xf32>
    %197 = math.rsqrt %196 : vector<4x1xf32>
    %198 = vector.broadcast %197 : vector<4x1xf32> to vector<4x288xf32>
    %199 = arith.mulf %194, %198 : vector<4x288xf32>
    %200 = arith.addf %11, %199 : vector<4x288xf32>
    %c0_106 = arith.constant 0 : index
    %c0_107 = arith.constant 0 : index
    %c0_108 = arith.constant 0 : index
    %201 = vector.load %arg7[%c0_106, %c0_107, %c0_108] : memref<1x4x288xf32, #tpu.memory_space<vmem>>, vector<1x4x288xf32>
    %202 = vector.shape_cast %201 : vector<1x4x288xf32> to vector<4x288xf32>
    %203 = vector.shape_cast %200 : vector<4x288xf32> to vector<1x4x288xf32>
    tpu.vector_store %arg7[%c0_106, %c0_107, %c0_108], %203 {strides = array<i32>} : memref<1x4x288xf32, #tpu.memory_space<vmem>>, vector<1x4x288xf32>,
    return
  }
  func.func @transform_0(%arg0: i32) -> (i32, i32, i32) {
    %c0_i32 = arith.constant 0 : i32
    %c0_i32_0 = arith.constant 0 : i32
    %c0_i32_1 = arith.constant 0 : i32
    return %arg0, %c0_i32, %c0_i32_0 : i32, i32, i32
  }
  func.func @transform_1(%arg0: i32) -> (i32, i32) {
    %c0_i32 = arith.constant 0 : i32
    %c0_i32_0 = arith.constant 0 : i32
    %c0_i32_1 = arith.constant 0 : i32
    return %c0_i32, %c0_i32_0 : i32, i32
  }
  func.func @transform_2(%arg0: i32) -> (i32, i32, i32) {
    %c0_i32 = arith.constant 0 : i32
    %c0_i32_0 = arith.constant 0 : i32
    %c0_i32_1 = arith.constant 0 : i32
    %c0_i32_2 = arith.constant 0 : i32
    return %c0_i32, %c0_i32_0, %c0_i32_1 : i32, i32, i32
  }
  func.func @transform_3(%arg0: i32) -> (i32, i32) {
    %c0_i32 = arith.constant 0 : i32
    %c0_i32_0 = arith.constant 0 : i32
    %c0_i32_1 = arith.constant 0 : i32
    return %c0_i32, %c0_i32_0 : i32, i32
  }
  func.func @transform_4(%arg0: i32) -> (i32, i32, i32) {
    %c0_i32 = arith.constant 0 : i32
    %c0_i32_0 = arith.constant 0 : i32
    %c0_i32_1 = arith.constant 0 : i32
    %c0_i32_2 = arith.constant 0 : i32
    return %c0_i32, %c0_i32_0, %c0_i32_1 : i32, i32, i32
  }
  func.func @transform_5(%arg0: i32) -> (i32, i32) {
    %c0_i32 = arith.constant 0 : i32
    %c0_i32_0 = arith.constant 0 : i32
    %c0_i32_1 = arith.constant 0 : i32
    return %c0_i32, %c0_i32_0 : i32, i32
  }
  func.func @transform_6(%arg0: i32) -> (i32, i32, i32) {
    %c0_i32 = arith.constant 0 : i32
    %c0_i32_0 = arith.constant 0 : i32
    %c0_i32_1 = arith.constant 0 : i32
    return %arg0, %c0_i32, %c0_i32_0 : i32, i32, i32
  }
}

</mosaic_0001>

<bundles_post_ra>
// kernel: tpu_custom_call.1
= control target key start
LH: loop header
LB: loop body
LE: loop exit
PB: predicated region body
PF: predicated region fallthrough
CT: control target
= control target key end

     0   :  { %11 = vsyncpa [#allocation4], 0  ;;  %s4694_s0 = inlined_call_operand.vmem [shape: f32[2,4,288], index: 0, kind: input, shape index: {}]   ;;  %s4695_s1 = inlined_call_operand.vmem [shape: s32[1,288], index: 1, kind: input, shape index: {}]   ;;  %s4696_s2 = inlined_call_operand.vmem [shape: f32[9,4,4], index: 2, kind: input, shape index: {}]   ;;  %s4697_s3 = inlined_call_operand.vmem [shape: f32[4,1], index: 3, kind: input, shape index: {}]   ;;  %s4698_s4 = inlined_call_operand.vmem [shape: f32[9,4,4], index: 4, kind: input, shape index: {}]   ;;  %s4699_s5 = inlined_call_operand.vmem [shape: f32[4,1], index: 5, kind: input, shape index: {}]   ;;  %s4700_s6 = inlined_call_operand.hbm [shape: f32[2,4,288], index: 6, kind: output, shape index: {}]  }
   0x1   :  { %13 = vsyncpa [#allocation4 + $0x1], 0  ;;  %s4049_s21 = smov 0   ;;  %s4051_s22 = smov 0  }
   0x2   :  { %s4053_s23 = smov 0   ;;  %s4055_s24 = smov 0  }
   0x3 LB: > { %s4070_s25 = sadd.s32 4294967295, %s3995_s24   ;;  %s3640_s26 = sadd.s32 4294967294, %s3995_s24   ;;  %s3995_s24 = sphi %s4055_s24, %s4845_s24   ;;  %s3991_s23 = sphi %s4053_s23, %s4844_s23   ;;  %s3987_s22 = sphi %s4051_s22, %s4843_s22   ;;  %s3983_s21 = sphi %s4049_s21, %s4842_s21  }
   0x4   : > { %s4074_s27 = sadd.s32 1, %s3995_s24   ;;  %s157_s28 = sadd.s32 1, %s3991_s23 }
   0x5   : > { %s154_s29 = ssub.s32 %s3995_s24, %s4074_s27  ;;  %p167_p0 = scmp.ne.s32.totalorder %s3991_s23, %s3987_s22 }
   0x6   : > { %p155_p1 = scmp.eq.s32.totalorder %s154_s29, 0  ;;  %p168_p2 = scmp.eq.s32.totalorder %s4070_s25, 1 }
   0x7   : > { %p173_p3 = scmp.ne.s32.totalorder %s3987_s22, %s3983_s21  ;;  %p174_p4 = scmp.eq.s32.totalorder %s3640_s26, 1 }
   0x8   : > { %s4085_s30 = scalar_select %p155_p1, %s3991_s23, %s157_s28  }
   0x9   : > { %p4087_p5 = por %p168_p2, %p167_p0  ;;  %p4091_p6 = por %p174_p4, %p173_p3 }
   0xa   : > { %p3643_p7 = scmp.ge.s32.totalorder %s3995_s24, 1  ;;  %p215_p8 = scmp.lt.s32.totalorder %s3995_s24, 3 }
   0xc   : > { %p216_p9 = pnand %p3643_p7, %p215_p8 }
   0xd   : > { %s4706_s9 = sand.u32 (!%p216_p9), 1, %s3987_s22   ;;  %p245_p10 = scmp.lt.s32.totalorder (!%p216_p9), %s4070_s25, 1 }
   0xe   : > { %219 = sbr.rel (%p216_p9) target bundleno = 2177 (0x881), region = 44  ;;  %p3645_p11 = scmp.ne.s32.totalorder (!%p216_p9), %s4070_s25, 0 }
   0xf   : > { %s3865_s10 = smul.u32 (!%p216_p9), 12, %s4706_s9 }
  0x11   : > { %s4107_s16 = scalar_lea.vmem (!%p216_p9), [#allocation3], %s3865_s10 }
  0x13   : > { %s246_s11 = scalar_select %p245_p10, %s4070_s25, 1 }
  0x14   : > { %253 = sbr.rel (%p3645_p11) target bundleno = 27 (0x1b), region = 48 }
  0x15   : > { %s3866_s12 = smul.u32 12, %s246_s11 }
  0x17   : > { %s4105_s15 = scalar_lea.vmem %s4694_s0, %s3866_s12 }
  0x19   : > { %vm255_vm0 = vcmask 568320   ;;  %v3997_v0 = vmov 0.0  }
  0x1a   : > { %254 = vst [vmem:[#allocation2] sm:$0xff] %v3997_v0  ;;  %256 = vst.msk [vmem:[#allocation2 + $0x8] sm:$0xf] %vm255_vm0, %v3997_v0 }
  0x1b PF: > { %v279_v1 = vld [vmem:[%s4105_s15] sm:$0xff]  ;;  %s3998_s17 = smov 19   ;;  %v280_v2 = vld [vmem:[%s4105_s15 + $0x8] sm:$0xf]  ;;  %vm293_vm1 = vcmask 1043608   ;;  %vm294_vm2 = vcmask 1047556   ;;  %v304_v13 = vlaneseq }
  0x1c   : > { %283 = vrot.lane.b32.xlu0 %v279_v1, %s3998_s17  ;;  %vm4703_vm3 = vcmask 154624   ;;  %vm4115_vm4 = vmor %vm294_vm2, %vm293_vm1  ;;  %vm4702_vm5 = vcmask 412672   ;;  %v3999_v7 = vmov 0   ;;  %s4000_s18 = smov 112   ;;  %s4001_s19 = smov 110   ;;  %vm4701_vm8 = vcmask 916480  }
  0x1d   : > { %3923 = vset.pattern.permute.xlu1 %v3999_v7  ;;  %3924 = vset.pattern.permute.xlu0 %v3999_v7  ;;  %s4002_s20 = smov 108   ;;  %v4138_v15 = vld [vmem:[%s4695_s1] sm:$0x7]  ;;  %v305_v16 = vshrl.u32 %v304_v13, 7  ;;  %vm4705_vm10 = vcmask 900096   ;;  %vm4704_vm13 = vcmask 883712  }
  0x1e   : > { %vm302_vm6 = vcmp.eq.s32.totalorder %v4138_v15, 17  ;;  %vm301_vm7 = vcmp.eq.s32.totalorder %v4138_v15, 0  ;;  %s4003_s29 = smov 54   ;;  %s4004_s10 = smov 18   ;;  %vm394_vm1 = vcmask 1043600   ;;  %v4005_v58 = vmov 0.0  }
  0x1f   : > { %v4141_v19 = vsub.s32 2, %v305_v16  ;;  %v4143_v20 = vsub.s32 0, %v305_v16  ;;  %v303_v22 = vsel %vm302_vm6, 1, %v3999_v7  ;;  %v4147_v23 = vsub.s32 1, %v305_v16  ;;  %3775 = vmatprep.subr.mxu1 %v4005_v58  ;;  %502 = vmatprep.mubr.f32.mxu0 %v4005_v58  ;;  %s4007_s11 = smov 127   ;;  %s4711_s12 = smov 126  }
  0x20   : > { %285 = vrot.lane.b32.xlu0 %v280_v2, %s3998_s17  ;;  %v349_v25 = vsel %vm301_vm7, 1, %v3999_v7  ;;  %vm4728_vm6 = vcmask 146432   ;;  %vm4205_vm7 = vmor %vm294_vm2, %vm394_vm1  ;;  %s4707_s13 = smov 109   ;;  %s4709_s14 = smov 92   ;;  %v277_v16 = vld [vmem:[%s4697_s3] sm:$0xf] }
  0x21   : > { %v315_v26 = vrot.slane %v303_v22, %v4141_v19  ;;  %v307_v27 = vrot.slane %v303_v22, %v4143_v20  ;;  %v311_v29 = vrot.slane %v303_v22, %v4147_v23  ;;  %v361_v30 = vrot.slane %v349_v25, %v4141_v19  ;;  %s4011_s26 = smov 91   ;;  %s4012_s28 = smov 90  }
  0x22   : > { %v353_v31 = vrot.slane %v349_v25, %v4143_v20  ;;  %v357_v32 = vrot.slane %v349_v25, %v4147_v23  ;;  %vm4726_vm2 = vcmask 1043456   ;;  %vm4725_vm1 = vcmask 31744  }
  0x23   : > { %vm4156_vm9 = vcmp.eq.s32.totalorder %v315_v26, 1  ;;  %vm4160_vm11 = vcmp.eq.s32.totalorder %v307_v27, 1  ;;  %vm4164_vm12 = vcmp.eq.s32.totalorder %v311_v29, 1  ;;  %vm4170_vm14 = vcmp.eq.s32.totalorder %v361_v30, 1  ;;  %v261_v27 = vld [vmem:[%s4696_s2 + $0x8] sm:$0xf] }
  0x24   : > { %vm4174_vm15 = vcmp.eq.s32.totalorder %v353_v31, 1  ;;  %vm4178_vm0 = vcmp.eq.s32.totalorder %v357_v32, 1 }
  0x8e   : > { %v284_v3 = vpop.permute.xlu0 %283 }
  0x8f   : > { %v287_v5 = vrot.slane %v284_v3, 4 }
  0x91   : > { %v289_v6 = vsel %vm4703_vm3, %v287_v5, %v284_v3 }
  0x92   : > { %296 = vst.msk [vmem:[#allocation2] sm:$0xff] %vm4115_vm4, %v289_v6  ;;  %v286_v8 = vpop.permute.xlu0 %285 }
  0x93   : > { %v290_v9 = vsel %vm4703_vm3, %v287_v5, %v286_v8  ;;  %vm4716_vm3 = vcmask 404480  }
  0x94   : > { %298 = vst.msk [vmem:[#allocation2 + $0x8] sm:$0xf] %vm4702_vm5, %v290_v9  ;;  %vm4717_vm5 = vcmask 441344  }
  0x99   : > { %v299_v10 = vld [vmem:[#allocation2] sm:$0xff] }
  0x9a   : > { %322 = vrot.lane.b32.xlu1 %v299_v10, %s4000_s18  ;;  %v321_v12 = vcombine.high %v299_v10, %v299_v10 }
  0x9b   : > { %v300_v11 = vld [vmem:[#allocation2 + $0x8] sm:$0xf] }
  0x9c   : > { %326 = vrot.lane.b32.xlu0 %v300_v11, %s4000_s18 }
  0x9e   : > { %334 = vrot.lane.b32.xlu1 %v299_v10, %s4001_s19 }
  0xa0   : > { %365 = vrot.lane.b32.xlu0 %v299_v10, %s4002_s20 }
  0xa2   : > { %338 = vrot.lane.b32.xlu1 %v300_v11, %s4001_s19 }
  0xa4   : > { %336 = vrot.lane.b32.xlu0 %v321_v12, %s4001_s19 }
  0xa6   : > { %324 = vrot.lane.b32.xlu1 %v321_v12, %s4000_s18 }
  0xa8   : > { %369 = vrot.lane.b32.xlu0 %v300_v11, %s4002_s20 }
  0xaa   : > { %367 = vrot.lane.b32.xlu1 %v321_v12, %s4002_s20 }
 0x10c   : > { %v323_v14 = vpop.permute.xlu1 %322 }
 0x10e   : > { %v327_v17 = vpop.permute.xlu0 %326 }
 0x110   : > { %v335_v18 = vpop.permute.xlu1 %334 }
 0x112   : > { %v366_v21 = vpop.permute.xlu0 %365 }
 0x114   : > { %v339_v24 = vpop.permute.xlu1 %338 }
 0x115   : > { %v348_v43 = vsel %vm4156_vm9, %v327_v17, %v339_v24 }
 0x116   : > { %v337_v28 = vpop.permute.xlu0 %336 }
 0x117   : > { %v341_v44 = vsel %vm4705_vm10, %v335_v18, %v337_v28  ;;  %v342_v45 = vsel %vm4705_vm10, %v337_v28, %v339_v24  ;;  %vm4713_vm10 = vcmask 552336   ;;  %v260_v18 = vld [vmem:[%s4696_s2 + $0x4] sm:$0xf]  ;;  %v259_v24 = vld [vmem:[%s4696_s2] sm:$0xf] }
 0x118   : > { %v325_v33 = vpop.permute.xlu1 %324 }
 0x119   : > { %v329_v37 = vsel %vm4701_vm8, %v323_v14, %v325_v33  ;;  %v330_v38 = vsel %vm4701_vm8, %v325_v33, %v327_v17  ;;  %vm4727_vm8 = vcmask 142336   ;;  %v262_v33 = vld [vmem:[%s4696_s2 + $0xc] sm:$0xf] }
 0x11a   : > { %v370_v39 = vpop.permute.xlu0 %369  ;;  %v346_v47 = vsel %vm4160_vm11, %v329_v37, %v341_v44  ;;  %v347_v48 = vsel %vm4164_vm12, %v330_v38, %v342_v45  ;;  %v263_v44 = vld [vmem:[%s4696_s2 + $0x10] sm:$0xf] }
 0x11b   : > { %v379_v51 = vsel %vm4170_vm14, %v370_v39, %v348_v43 }
 0x11c   : > { %v368_v46 = vpop.permute.xlu1 %367 }
 0x11d   : > { %v372_v49 = vsel %vm4704_vm13, %v366_v21, %v368_v46  ;;  %v373_v50 = vsel %vm4704_vm13, %v368_v46, %v370_v39  ;;  %vm4722_vm13 = vmmov 0  }
 0x11e   : > { %v377_v52 = vsel %vm4174_vm15, %v372_v49, %v346_v47  ;;  %v378_v53 = vsel %vm4178_vm0, %v373_v50, %v347_v48  ;;  %3777 = vmatprep.mubr.msk.f32.mxu1 %vm4722_vm13, %v4005_v58  ;;  %v264_v47 = vld [vmem:[%s4696_s2 + $0x14] sm:$0xf] }
 0x11f   : > { %v404_v54 = vcombine.low %v378_v53, %v379_v51  ;;  %v383_v55 = vcombine.low %v377_v52, %v378_v53 }
 0x121   : > { %405 = vrot.lane.b32.xlu0 %v404_v54, %s4003_s29  ;;  %384 = vrot.lane.b32.xlu1 %v383_v55, %s4004_s10  ;;  %v265_v54 = vld [vmem:[%s4696_s2 + $0x18] sm:$0xf] }
 0x125   : > { %399 = vrot.lane.b32.xlu0 %v377_v52, %s4001_s19  ;;  %386 = vrot.lane.b32.xlu1 %v379_v51, %s4004_s10 }
 0x193   : > { %v406_v56 = vpop.permute.xlu0 %405  ;;  %v385_v57 = vpop.permute.xlu1 %384 }
 0x194   : > { %v388_v60 = vrot.slane %v385_v57, 4  ;;  %v407_v61 = vrot.slane %v406_v56, 4 }
 0x196   : > { %v390_v62 = vsel %vm4728_vm6, %v388_v60, %v385_v57  ;;  %v409_v2 = vsel %vm4717_vm5, %v406_v56, %v407_v61 }
 0x197   : > { %396 = vst.msk [vmem:[#allocation2] sm:$0xff] %vm4205_vm7, %v390_v62  ;;  %v400_v63 = vpop.permute.xlu0 %399  ;;  %v387_v0 = vpop.permute.xlu1 %386 }
 0x198   : > { %403 = vst.msk [vmem:[#allocation2] sm:$0xf] %vm4727_vm8, %v400_v63  ;;  %v391_v1 = vsel %vm4728_vm6, %v388_v60, %v387_v0 }
 0x199   : > { %398 = vst.msk [vmem:[#allocation2 + $0x8] sm:$0xf] %vm4716_vm3, %v391_v1  ;;  %vm4747_vm3 = vcmask 900096  }
 0x19a   : > { %412 = vst.msk [vmem:[#allocation2 + $0x8] sm:$0xf] %vm4713_vm10, %v409_v2  ;;  %vm4714_vm10 = vcmask 1039360   ;;  %vm4748_vm5 = vmmov %vm4747_vm3  ;;  %v266_v2 = vld [vmem:[%s4696_s2 + $0x1c] sm:$0xf] }
 0x19f   : > { %v4219_v3 = vld [vmem:[#allocation2] sm:$0xff] }
 0x1a0   : > { %418 = vrot.lane.b32.xlu1 %v4219_v3, %s4007_s11  ;;  %v4232_v9 = vcombine.high %v4219_v3, %v4219_v3 }
 0x1a1   : > { %v414_v5 = vld [vmem:[#allocation2 + $0x8] sm:$0xf] }
 0x1a2   : > { %422 = vrot.lane.b32.xlu0 %v414_v5, %s4007_s11  ;;  %v730_v6 = vld [vmem:[#allocation2 + $0x8] sm:$0xf] }
 0x1a3   : > { %v897_v8 = vld [vmem:[#allocation2 + $0x8] sm:$0xf] }
 0x1a4   : > { %738 = vrot.lane.b32.xlu1 %v730_v6, %s4711_s12  ;;  %v1063_v10 = vld [vmem:[#allocation2 + $0x8] sm:$0xf] }
 0x1a5   : > { %v1230_v11 = vld [vmem:[#allocation2 + $0x8] sm:$0xf] }
 0x1a6   : > { %734 = vrot.lane.b32.xlu0 %v4219_v3, %s4711_s12  ;;  %v1396_v12 = vld [vmem:[#allocation2 + $0x8] sm:$0xf] }
 0x1a7   : > { %v1563_v13 = vld [vmem:[#allocation2 + $0x8] sm:$0xf] }
 0x1a8   : > { %901 = vrot.lane.b32.xlu1 %v4219_v3, %s4001_s19  ;;  %v1730_v14 = vld [vmem:[#allocation2 + $0x8] sm:$0xf] }
 0x1aa   : > { %905 = vrot.lane.b32.xlu0 %v897_v8, %s4001_s19 }
 0x1ac   : > { %420 = vrot.lane.b32.xlu1 %v4232_v9, %s4007_s11 }
 0x1ae   : > { %1067 = vrot.lane.b32.xlu0 %v4219_v3, %s4707_s13 }
 0x1b0   : > { %1071 = vrot.lane.b32.xlu1 %v1063_v10, %s4707_s13  ;;  %v267_v10 = vld [vmem:[%s4696_s2 + $0x20] sm:$0xf] }
 0x1b2   : > { %736 = vrot.lane.b32.xlu0 %v4232_v9, %s4711_s12  ;;  %s3581_s12 = sshll.u32 %s4107_s16, 4  ;;  %s3582_s12 = int_to_ptr.vmem [resolvable:$true] %s3581_s12 }
 0x1b4   : > { %1234 = vrot.lane.b32.xlu1 %v4219_v3, %s4002_s20 }
 0x1b6   : > { %1238 = vrot.lane.b32.xlu0 %v1230_v11, %s4002_s20 }
 0x1b8   : > { %903 = vrot.lane.b32.xlu1 %v4232_v9, %s4001_s19 }
 0x1ba   : > { %1069 = vrot.lane.b32.xlu0 %v4232_v9, %s4707_s13  ;;  %s3867_s13 = smul.u32 192, %s4070_s25  ;;  %s4013_s25 = smov [#allocation3]  }
 0x1bc   : > { %1404 = vrot.lane.b32.xlu1 %v1396_v12, %s4709_s14 }
 0x1be   : > { %1400 = vrot.lane.b32.xlu0 %v4219_v3, %s4709_s14 }
 0x1c0   : > { %1236 = vrot.lane.b32.xlu1 %v4232_v9, %s4002_s20 }
 0x1c2   : > { %1402 = vrot.lane.b32.xlu0 %v4232_v9, %s4709_s14 }
 0x1c4   : > { %1567 = vrot.lane.b32.xlu1 %v4219_v3, %s4011_s26 }
 0x1c6   : > { %1571 = vrot.lane.b32.xlu0 %v1563_v13, %s4011_s26 }
 0x1c8   : > { %1569 = vrot.lane.b32.xlu1 %v4232_v9, %s4011_s26 }
 0x1ca   : > { %1736 = vrot.lane.b32.xlu0 %v4232_v9, %s4012_s28 }
 0x1cc   : > { %1738 = vrot.lane.b32.xlu1 %v1730_v14, %s4012_s28 }
 0x1ce   : > { %1734 = vrot.lane.b32.xlu0 %v4219_v3, %s4012_s28 }
 0x1d0   : > { %1898 = vperm.xlu1 %3923, %v277_v16  }
 0x212   : > { %v419_v17 = vpop.permute.xlu1 %418 }
 0x214   : > { %v423_v21 = vpop.permute.xlu0 %422 }
 0x215   : > { %3776 = vmatpush3.msk.msra.mxu1 %vm4726_vm2, %v423_v21 }
 0x216   : > { %3778 = vmatmul.mubr.msk.f32.vlgmr.msra.gmra.mxu1 %vm4725_vm1, %v260_v18  ;;  %3780 = vmatprep.subr.mxu1 %v4005_v58  ;;  %v739_v22 = vpop.permute.xlu1 %738 }
 0x217   : > { %3781 = vmatpush3.msk.msra.mxu1 %vm4726_vm2, %v414_v5  ;;  %3782 = vmatprep.mubr.msk.f32.mxu1 %vm4722_vm13, %v4005_v58 }
 0x218   : > { %v735_v25 = vpop.permute.xlu0 %734  ;;  %3785 = vmatprep.subr.mxu1 %v4005_v58 }
 0x21a   : > { %3783 = vmatmul.mubr.msk.f32.vlgmr.msra.gmra.mxu1 %vm4725_vm1, %v259_v24  ;;  %v902_v26 = vpop.permute.xlu1 %901 }
 0x21b   : > { %3786 = vmatpush3.msk.msra.mxu1 %vm4726_vm2, %v739_v22  ;;  %3787 = vmatprep.mubr.msk.f32.mxu1 %vm4722_vm13, %v4005_v58 }
 0x21c   : > { %v906_v28 = vpop.permute.xlu0 %905  ;;  %3790 = vmatprep.subr.mxu1 %v4005_v58 }
 0x21e   : > { %3788 = vmatmul.mubr.msk.f32.vlgmr.msra.gmra.mxu1 %vm4725_vm1, %v261_v27  ;;  %v421_v29 = vpop.permute.xlu1 %420 }
 0x21f   : > { %3791 = vmatpush3.msk.msra.mxu1 %vm4726_vm2, %v906_v28  ;;  %v426_v30 = vsel %vm4714_vm10, %v421_v29, %v423_v21  ;;  %v425_v31 = vsel %vm4714_vm10, %v419_v17, %v421_v29  ;;  %3792 = vmatprep.mubr.msk.f32.mxu1 %vm4722_vm13, %v4005_v58  ;;  %vm4715_vm10 = vcmask 1031168  }
 0x220   : > { %v1068_v32 = vpop.permute.xlu0 %1067  ;;  %3646 = vmatprep.subr.msk.mxu0 %vm4726_vm2, %v426_v30  ;;  %3795 = vmatprep.subr.mxu1 %v4005_v58 }
 0x221   : > { %3647 = vmatpush1.msk.msra.mxu0 %vm4726_vm2, %v425_v31 }
 0x222   : > { %3648 = vmatmul.mubr.msk.f32.vlgmr.msra.gmra.mxu0 %vm4725_vm1, %v260_v18  ;;  %3651 = vmatprep.subr.msk.mxu0 %vm4726_vm2, %v4232_v9  ;;  %v1072_v37 = vpop.permute.xlu1 %1071 }
 0x223   : > { %3652 = vmatpush1.msk.msra.mxu0 %vm4726_vm2, %v4219_v3  ;;  %3793 = vmatmul.mubr.msk.f32.vlgmr.msra.gmra.mxu1 %vm4725_vm1, %v262_v33 }
 0x224   : > { %3796 = vmatpush3.msk.msra.mxu1 %vm4726_vm2, %v1072_v37  ;;  %v737_v38 = vpop.permute.xlu0 %736  ;;  %652 = vmatprep.mubr.f32.mxu0 %v4005_v58 }
 0x225   : > { %v741_v39 = vsel %vm4715_vm10, %v735_v25, %v737_v38  ;;  %v742_v43 = vsel %vm4715_vm10, %v737_v38, %v739_v22  ;;  %3797 = vmatprep.mubr.msk.f32.mxu1 %vm4722_vm13, %v4005_v58  ;;  %3800 = vmatprep.subr.mxu1 %v4005_v58  ;;  %vm4718_vm10 = vcmask 891904  }
 0x226   : > { %3653 = vmatmul.mubr.msk.f32.vlgmr.msra.gmra.mxu0 %vm4725_vm1, %v259_v24  ;;  %3656 = vmatprep.subr.msk.mxu0 %vm4726_vm2, %v742_v43  ;;  %v1235_v45 = vpop.permute.xlu1 %1234 }
 0x227   : > { %3657 = vmatpush1.msk.msra.mxu0 %vm4726_vm2, %v741_v39  ;;  %816 = vmatprep.mubr.f32.mxu0 %v4005_v58 }
 0x228   : > { %v1239_v46 = vpop.permute.xlu0 %1238  ;;  %3798 = vmatmul.mubr.msk.f32.vlgmr.msra.gmra.mxu1 %vm4725_vm1, %v263_v44 }
 0x229   : > { %3801 = vmatpush3.msk.msra.mxu1 %vm4726_vm2, %v1239_v46  ;;  %3802 = vmatprep.mubr.msk.f32.mxu1 %vm4722_vm13, %v4005_v58 }
 0x22a   : > { %3658 = vmatmul.mubr.msk.f32.vlgmr.msra.gmra.mxu0 %vm4725_vm1, %v261_v27  ;;  %v904_v48 = vpop.permute.xlu1 %903  ;;  %3805 = vmatprep.subr.mxu1 %v4005_v58 }
 0x22b   : > { %v907_v49 = vsel %vm4747_vm3, %v902_v26, %v904_v48  ;;  %v908_v50 = vsel %vm4748_vm5, %v904_v48, %v906_v28  ;;  %982 = vmatprep.mubr.f32.mxu0 %v4005_v58  ;;  %vm4721_vm3 = vcmask 752640   ;;  %vm4749_vm5 = vcmask 883712  }
 0x22c   : > { %v1070_v51 = vpop.permute.xlu0 %1069  ;;  %3661 = vmatprep.subr.msk.mxu0 %vm4726_vm2, %v908_v50  ;;  %3803 = vmatmul.mubr.msk.f32.vlgmr.msra.gmra.mxu1 %vm4725_vm1, %v264_v47 }
 0x22d   : > { %v1074_v52 = vsel %vm4718_vm10, %v1068_v32, %v1070_v51  ;;  %v1075_v53 = vsel %vm4718_vm10, %v1070_v51, %v1072_v37  ;;  %3662 = vmatpush1.msk.msra.mxu0 %vm4726_vm2, %v907_v49  ;;  %3807 = vmatprep.mubr.msk.f32.mxu1 %vm4722_vm13, %v4005_v58  ;;  %vm4750_vm10 = vmmov %vm4749_vm5 }
 0x22e   : > { %3663 = vmatmul.mubr.msk.f32.vlgmr.msra.gmra.mxu0 %vm4725_vm1, %v262_v33  ;;  %3666 = vmatprep.subr.msk.mxu0 %vm4726_vm2, %v1075_v53  ;;  %v1405_v55 = vpop.permute.xlu1 %1404 }
 0x22f   : > { %3667 = vmatpush1.msk.msra.mxu0 %vm4726_vm2, %v1074_v52  ;;  %3806 = vmatpush3.msk.msra.mxu1 %vm4726_vm2, %v1405_v55 }
 0x230   : > { %v1401_v56 = vpop.permute.xlu0 %1400  ;;  %1149 = vmatprep.mubr.f32.mxu0 %v4005_v58  ;;  %3808 = vmatmul.mubr.msk.f32.vlgmr.msra.gmra.mxu1 %vm4725_vm1, %v265_v54 }
 0x231   : > { %3810 = vmatprep.subr.mxu1 %v4005_v58  ;;  %3812 = vmatprep.mubr.msk.f32.mxu1 %vm4722_vm13, %v4005_v58 }
 0x232   : > { %3668 = vmatmul.mubr.msk.f32.vlgmr.msra.gmra.mxu0 %vm4725_vm1, %v263_v44  ;;  %v1237_v57 = vpop.permute.xlu1 %1236 }
 0x233   : > { %v1240_v60 = vsel %vm4749_vm5, %v1235_v45, %v1237_v57  ;;  %v1241_v61 = vsel %vm4750_vm10, %v1237_v57, %v1239_v46  ;;  %1315 = vmatprep.mubr.f32.mxu0 %v4005_v58  ;;  %vm4720_vm10 = vcmask 744448   ;;  %vm4719_vm5 = vcmask 736256  }
 0x234   : > { %v1403_v62 = vpop.permute.xlu0 %1402  ;;  %3671 = vmatprep.subr.msk.mxu0 %vm4726_vm2, %v1241_v61 }
 0x235   : > { %v1407_v63 = vsel %vm4721_vm3, %v1401_v56, %v1403_v62  ;;  %v1408_v0 = vsel %vm4721_vm3, %v1403_v62, %v1405_v55  ;;  %3672 = vmatpush1.msk.msra.mxu0 %vm4726_vm2, %v1240_v60 }
 0x236   : > { %3673 = vmatmul.mubr.msk.f32.vlgmr.msra.gmra.mxu0 %vm4725_vm1, %v264_v47  ;;  %3676 = vmatprep.subr.msk.mxu0 %vm4726_vm2, %v1408_v0  ;;  %v1568_v1 = vpop.permute.xlu1 %1567 }
 0x237   : > { %3677 = vmatpush1.msk.msra.mxu0 %vm4726_vm2, %v1407_v63  ;;  %1482 = vmatprep.mubr.f32.mxu0 %v4005_v58 }
 0x238   : > { %v1572_v3 = vpop.permute.xlu0 %1571 }
 0x239   : > { %3811 = vmatpush3.msk.msra.mxu1 %vm4726_vm2, %v1572_v3 }
 0x23a   : > { %3678 = vmatmul.mubr.msk.f32.vlgmr.msra.gmra.mxu0 %vm4725_vm1, %v265_v54  ;;  %3813 = vmatmul.mubr.msk.f32.vlgmr.msra.gmra.mxu1 %vm4725_vm1, %v266_v2  ;;  %v1570_v5 = vpop.permute.xlu1 %1569 }
 0x23b   : > { %v1574_v6 = vsel %vm4720_vm10, %v1568_v1, %v1570_v5  ;;  %v1575_v8 = vsel %vm4720_vm10, %v1570_v5, %v1572_v3  ;;  %1649 = vmatprep.mubr.f32.mxu0 %v4005_v58  ;;  %3815 = vmatprep.subr.mxu1 %v4005_v58 }
 0x23c   : > { %v1737_v9 = vpop.permute.xlu0 %1736  ;;  %3681 = vmatprep.subr.msk.mxu0 %vm4726_vm2, %v1575_v8  ;;  %3817 = vmatprep.mubr.msk.f32.mxu1 %vm4722_vm13, %v4005_v58 }
 0x23d   : > { %3682 = vmatpush1.msk.msra.mxu0 %vm4726_vm2, %v1574_v6 }
 0x23e   : > { %3683 = vmatmul.mubr.msk.f32.vlgmr.msra.gmra.mxu0 %vm4725_vm1, %v266_v2  ;;  %v1739_v11 = vpop.permute.xlu1 %1738 }
 0x23f   : > { %v1742_v12 = vsel %vm4719_vm5, %v1737_v9, %v1739_v11  ;;  %3816 = vmatpush3.msk.msra.mxu1 %vm4726_vm2, %v1739_v11  ;;  %1816 = vmatprep.mubr.f32.mxu0 %v4005_v58 }
 0x240   : > { %v1735_v13 = vpop.permute.xlu0 %1734  ;;  %3686 = vmatprep.subr.msk.mxu0 %vm4726_vm2, %v1742_v12  ;;  %3818 = vmatmul.mubr.msk.f32.vlgmr.msra.gmra.mxu1 %vm4725_vm1, %v267_v10 }
 0x241   : > { %v1741_v14 = vsel %vm4719_vm5, %v1735_v13, %v1737_v9  ;;  %3820 = vmatprep.subr.mxu1 %v4005_v58  ;;  %3822 = vmatprep.mubr.msk.f32.mxu1 %vm4722_vm13, %v4005_v58  ;;  %vm258_vm5 = vcmp.lt.s32.totalorder %v4138_v15, 16  ;;  %vm4724_vm13 = vcmask 257024  }
 0x242   : > { %3687 = vmatpush1.msk.msra.mxu0 %vm4726_vm2, %v1741_v14 }
 0x243   : > { %3688 = vmatmul.mubr.msk.f32.vlgmr.msra.gmra.mxu0 %vm4725_vm1, %v267_v10 }
 0x244   : > { %2128 = vmatprep.mubr.f32.mxu0 %v4005_v58 }
 0x2d6   : > { %v575_v16 = vpop.f32.mrf.mxu1 }
 0x2d8   : > { %v3779_v17 = vpop.f32.mrf.mxu1 }
 0x2d9   : > { %v1904_v17 = vsel %vm258_vm5, 1, %v3999_v7 }
 0x2da   : > { %v725_v18 = vpop.f32.mrf.mxu1  ;;  %v1912_v15 = vrot.slane %v1904_v17, %v4147_v23 }
 0x2db   : > { %v726_v32 = vadd.f32 %v725_v18, %v575_v16  ;;  %v1908_v18 = vrot.slane %v1904_v17, %v4143_v20 }
 0x2dc   : > { %v3784_v21 = vpop.f32.mrf.mxu1  ;;  %vm4403_vm5 = vcmp.eq.s32.totalorder %v1912_v15, 1 }
 0x2dd   : > { %vm4399_vm10 = vcmp.eq.s32.totalorder %v1908_v18, 1 }
 0x2de   : > { %v889_v22 = vpop.f32.mrf.mxu1 }
 0x2df   : > { %v895_v43 = vadd.f32 %v889_v22, %v726_v32 }
 0x2e0   : > { %v3789_v24 = vpop.f32.mrf.mxu1 }
 0x2e2   : > { %v504_v25 = vpop.f32.mrf.mxu0 }
 0x2e3   : > { %v1055_v26 = vpop.f32.mrf.mxu1 }
 0x2e4   : > { %v506_v27 = vpop.f32.mrf.mxu0  ;;  %v1061_v48 = vadd.f32 %v1055_v26, %v895_v43  ;;  %v1899_v26 = vpop.permute.xlu1 %1898 }
 0x2e5   : > { %v3794_v28 = vpop.f32.mrf.mxu1 }
 0x2e6   : > { %v654_v29 = vpop.f32.mrf.mxu0  ;;  %v1916_v28 = vrot.slane %v1904_v17, %v4141_v19 }
 0x2e7   : > { %v655_v52 = vadd.f32 %v654_v29, %v504_v25 }
 0x2e8   : > { %v656_v30 = vpop.f32.mrf.mxu0  ;;  %v1222_v31 = vpop.f32.mrf.mxu1  ;;  %vm4407_vm3 = vcmp.eq.s32.totalorder %v1916_v28, 1 }
 0x2e9   : > { %v1228_v53 = vadd.f32 %v1222_v31, %v1061_v48  ;;  %v657_v55 = vadd.f32 %v656_v30, %v506_v27 }
 0x2ea   : > { %v818_v33 = vpop.f32.mrf.mxu0  ;;  %v3799_v37 = vpop.f32.mrf.mxu1 }
 0x2eb   : > { %v893_v56 = vadd.f32 %v818_v33, %v655_v52 }
 0x2ec   : > { %v820_v38 = vpop.f32.mrf.mxu0  ;;  %v1388_v39 = vpop.f32.mrf.mxu1 }
 0x2ed   : > { %v894_v60 = vadd.f32 %v820_v38, %v657_v55  ;;  %v1394_v61 = vadd.f32 %v1388_v39, %v1228_v53 }
 0x2ee   : > { %v984_v44 = vpop.f32.mrf.mxu0  ;;  %v3804_v45 = vpop.f32.mrf.mxu1 }
 0x2ef   : > { %v1059_v62 = vadd.f32 %v984_v44, %v893_v56 }
 0x2f0   : > { %v986_v46 = vpop.f32.mrf.mxu0  ;;  %v1555_v47 = vpop.f32.mrf.mxu1 }
 0x2f1   : > { %v1060_v1 = vadd.f32 %v986_v46, %v894_v60  ;;  %v1561_v6 = vadd.f32 %v1555_v47, %v1394_v61 }
 0x2f2   : > { %v1151_v49 = vpop.f32.mrf.mxu0  ;;  %v3809_v50 = vpop.f32.mrf.mxu1 }
 0x2f3   : > { %v1226_v2 = vadd.f32 %v1151_v49, %v1059_v62 }
 0x2f4   : > { %v1153_v51 = vpop.f32.mrf.mxu0 }
 0x2f5   : > { %v1227_v8 = vadd.f32 %v1153_v51, %v1060_v1 }
 0x2f6   : > { %v1317_v54 = vpop.f32.mrf.mxu0 }
 0x2f7   : > { %v1392_v9 = vadd.f32 %v1317_v54, %v1226_v2 }
 0x2f8   : > { %v1319_v57 = vpop.f32.mrf.mxu0 }
 0x2f9   : > { %v1393_v11 = vadd.f32 %v1319_v57, %v1227_v8 }
 0x2fa   : > { %v1484_v63 = vpop.f32.mrf.mxu0  ;;  %v1722_v0 = vpop.f32.mrf.mxu1 }
 0x2fb   : > { %v1559_v12 = vadd.f32 %v1484_v63, %v1392_v9  ;;  %v1728_v13 = vadd.f32 %v1722_v0, %v1561_v6 }
 0x2fc   : > { %v1486_v3 = vpop.f32.mrf.mxu0  ;;  %v3814_v5 = vpop.f32.mrf.mxu1 }
 0x2fd   : > { %v1560_v21 = vadd.f32 %v1486_v3, %v1393_v11 }
 0x2fe   : > { %v1651_v10 = vpop.f32.mrf.mxu0 }
 0x2ff   : > { %v1726_v22 = vadd.f32 %v1651_v10, %v1559_v12 }
 0x300   : > { %v1653_v14 = vpop.f32.mrf.mxu0  ;;  %v1889_v16 = vpop.f32.mrf.mxu1 }
 0x301   : > { %v1895_v24 = vadd.f32 %v1889_v16, %v1728_v13  ;;  %v1727_v29 = vadd.f32 %v1653_v14, %v1560_v21 }
 0x302   : > { %v3819_v25 = vpop.f32.mrf.mxu1 }
 0x303   : > { %v1818_v27 = vpop.f32.mrf.mxu0  ;;  %v1903_v7 = vadd.f32 %v1899_v26, %v1895_v24 }
 0x304   : > { %v1893_v30 = vadd.f32 %v1818_v27, %v1726_v22 }
 0x305   : > { %v1820_v32 = vpop.f32.mrf.mxu0  ;;  %v1922_v43 = vsel %vm4407_vm3, %v1903_v7, 0.0 }
 0x306   : > { %v1901_v33 = vadd.f32 %v1899_v26, %v1893_v30  ;;  %v1894_v20 = vadd.f32 %v1820_v32, %v1727_v29  ;;  %v1927_v47 = vsel %vm4724_vm13, %v1922_v43, 0.0 }
 0x308   : > { %v1920_v19 = vsel %vm4399_vm10, %v1901_v33, 0.0  ;;  %v1902_v23 = vadd.f32 %v1899_v26, %v1894_v20 }
 0x309   : > { %v1923_v44 = vsel %vm4726_vm2, %v1920_v19, 0.0 }
 0x30a   : > { %v1921_v39 = vsel %vm4403_vm5, %v1902_v23, 0.0 }
 0x30b   : > { %v1924_v45 = vsel %vm4726_vm2, %v1921_v39, 0.0 }
 0x30c   : > { %v1925_v46 = vadd.f32 %v1924_v45, %v1923_v44 }
 0x30e   : > { %v1928_v48 = vadd.f32 %v1927_v47, %v1925_v46 }
 0x310   : > { %1929 = vadd.xlane.f32.xlu0 %v1928_v48 }
 0x399   : > { %v1930_v49 = vpop.xlane.xlu0 %1929 }
 0x39a   : > { %v1931_v50 = vmul.f32 0.00390625, %v1930_v49 }
 0x39c   : > { %v1932_v51 = vsub.f32 %v1901_v33, %v1931_v50  ;;  %v1933_v52 = vsub.f32 %v1902_v23, %v1931_v50  ;;  %v1934_v53 = vsub.f32 %v1903_v7, %v1931_v50 }
 0x39e   : > { %v1935_v54 = vsel %vm4399_vm10, %v1932_v51, 0.0  ;;  %v1936_v55 = vsel %vm4403_vm5, %v1933_v52, 0.0  ;;  %v1937_v56 = vsel %vm4407_vm3, %v1934_v53, 0.0 }
 0x39f   : > { %v1938_v57 = vmul.f32 %v1935_v54, %v1935_v54  ;;  %v1939_v60 = vmul.f32 %v1936_v55, %v1936_v55  ;;  %v1940_v61 = vmul.f32 %v1937_v56, %v1937_v56 }
 0x3a1   : > { %v1941_v62 = vsel %vm4726_vm2, %v1938_v57, 0.0  ;;  %v1942_v63 = vsel %vm4726_vm2, %v1939_v60, 0.0  ;;  %v1944_v1 = vsel %vm4724_vm13, %v1940_v61, 0.0  ;;  %vm4757_vm13 = vcmask 154624  }
 0x3a2   : > { %v1943_v0 = vadd.f32 %v1942_v63, %v1941_v62  ;;  %vm4758_vm1 = vmmov %vm4757_vm13  ;;  %vm4759_vm2 = vcmask 412672  }
 0x3a4   : > { %v1945_v2 = vadd.f32 %v1944_v1, %v1943_v0 }
 0x3a6   : > { %1946 = vadd.xlane.f32.xlu1 %v1945_v2 }
 0x42f   : > { %v1947_v3 = vpop.xlane.xlu1 %1946 }
 0x430   : > { %v1948_v5 = vmul.f32 0.00390625, %v1947_v3 }
 0x432   : > { %v1949_v6 = vadd.f32 1e-05, %v1948_v5  ;;  %v278_v5 = vld [vmem:[%s4699_s5] sm:$0xf] }
 0x434   : > { %3929 = vrsqrt.f32 %v1949_v6 }
 0x441   : > { %v3930_v8 = vpop.eup %3929 }
 0x442   : > { %v1953_v9 = vmul.f32 %v3930_v8, %v1934_v53  ;;  %v1951_v10 = vmul.f32 %v3930_v8, %v1932_v51  ;;  %v1952_v11 = vmul.f32 %v3930_v8, %v1933_v52  ;;  %v269_v8 = vld [vmem:[%s4698_s4 + $0x4] sm:$0xf] }
 0x444   : > { %v1956_v12 = vmax.f32 %v1953_v9, 0.0  ;;  %v1954_v13 = vmax.f32 %v1951_v10, 0.0  ;;  %v1955_v14 = vmax.f32 %v1952_v11, 0.0  ;;  %v268_v11 = vld [vmem:[%s4698_s4] sm:$0xf] }
 0x446   : > { %1963 = vrot.lane.b32.xlu1 %v1956_v12, %s3998_s17  ;;  %v1960_v16 = vcombine.low %v1954_v13, %v1955_v14  ;;  %v270_v14 = vld [vmem:[%s4698_s4 + $0x8] sm:$0xf] }
 0x448   : > { %1961 = vrot.lane.b32.xlu0 %v1960_v16, %s3998_s17  ;;  %s4772_s17 = smov 126  }
 0x4b8   : > { %v1964_v21 = vpop.permute.xlu1 %1963 }
 0x4ba   : > { %v1962_v17 = vpop.permute.xlu0 %1961 }
 0x4bb   : > { %v1965_v18 = vrot.slane %v1962_v17, 4 }
 0x4bd   : > { %v1966_v22 = vsel %vm4757_vm13, %v1965_v18, %v1962_v17  ;;  %v1967_v24 = vsel %vm4758_vm1, %v1965_v18, %v1964_v21  ;;  %vm4761_vm13 = vcmask 916480   ;;  %vm4763_vm1 = vcmask 883712  }
 0x4be   : > { %1970 = vst.msk [vmem:[#allocation2] sm:$0xff] %vm4115_vm4, %v1966_v22  ;;  %vm4760_vm4 = vcmask 900096   ;;  %vm4764_vm8 = vmmov %vm4761_vm13 }
 0x4bf   : > { %1971 = vst.msk [vmem:[#allocation2 + $0x8] sm:$0xf] %vm4759_vm2, %v1967_v24  ;;  %vm4762_vm2 = vmmov %vm4760_vm4  ;;  %v271_v24 = vld [vmem:[%s4698_s4 + $0xc] sm:$0xf] }
 0x4c0   : > { %vm4765_vm6 = vmmov %vm4763_vm1 }
 0x4c5   : > { %v1972_v25 = vld [vmem:[#allocation2] sm:$0xff] }
 0x4c6   : > { %1988 = vrot.lane.b32.xlu1 %v1972_v25, %s4001_s19  ;;  %1977 = vrot.lane.b32.xlu0 %v1972_v25, %s4000_s18  ;;  %v1973_v26 = vld [vmem:[#allocation2 + $0x8] sm:$0xf]  ;;  %v1976_v27 = vcombine.high %v1972_v25, %v1972_v25 }
 0x4ca   : > { %1992 = vrot.lane.b32.xlu1 %v1973_v26, %s4001_s19  ;;  %1981 = vrot.lane.b32.xlu0 %v1973_v26, %s4000_s18 }
 0x4ce   : > { %2002 = vrot.lane.b32.xlu0 %v1972_v25, %s4002_s20  ;;  %1979 = vrot.lane.b32.xlu1 %v1976_v27, %s4000_s18  ;;  %s4773_s18 = smov 109  }
 0x4d2   : > { %1990 = vrot.lane.b32.xlu0 %v1976_v27, %s4001_s19  ;;  %2004 = vrot.lane.b32.xlu1 %v1976_v27, %s4002_s20 }
 0x4d6   : > { %2006 = vrot.lane.b32.xlu0 %v1973_v26, %s4002_s20 }
 0x538   : > { %v1989_v4 = vpop.permute.xlu1 %1988  ;;  %v1978_v15 = vpop.permute.xlu0 %1977 }
 0x53c   : > { %v1993_v28 = vpop.permute.xlu1 %1992  ;;  %v1982_v29 = vpop.permute.xlu0 %1981 }
 0x53d   : > { %v2001_v44 = vsel %vm4156_vm9, %v1982_v29, %v1993_v28  ;;  %vm4767_vm9 = vcmask 142336  }
 0x540   : > { %v2003_v30 = vpop.permute.xlu0 %2002  ;;  %v1980_v32 = vpop.permute.xlu1 %1979 }
 0x541   : > { %v1983_v19 = vsel %vm4761_vm13, %v1978_v15, %v1980_v32  ;;  %v1984_v45 = vsel %vm4764_vm8, %v1980_v32, %v1982_v29  ;;  %vm4766_vm8 = vcmask 146432   ;;  %v272_v15 = vld [vmem:[%s4698_s4 + $0x10] sm:$0xf] }
 0x544   : > { %v1991_v7 = vpop.permute.xlu0 %1990  ;;  %v2005_v33 = vpop.permute.xlu1 %2004 }
 0x545   : > { %v1994_v20 = vsel %vm4760_vm4, %v1989_v4, %v1991_v7  ;;  %v1995_v23 = vsel %vm4762_vm2, %v1991_v7, %v1993_v28  ;;  %v2008_v43 = vsel %vm4763_vm1, %v2003_v30, %v2005_v33  ;;  %vm4778_vm4 = vmmov 0   ;;  %v273_v30 = vld [vmem:[%s4698_s4 + $0x14] sm:$0xf] }
 0x546   : > { %v1999_v39 = vsel %vm4160_vm11, %v1983_v19, %v1994_v20  ;;  %v2000_v47 = vsel %vm4164_vm12, %v1984_v45, %v1995_v23  ;;  %vm4768_vm11 = vmmov %vm4766_vm8  ;;  %vm4769_vm12 = vcmask 441344  }
 0x547   : > { %v2013_v35 = vsel %vm4174_vm15, %v2008_v43, %v1999_v39  ;;  %vm4771_vm15 = vcmask 552336   ;;  %v274_v39 = vld [vmem:[%s4698_s4 + $0x18] sm:$0xf] }
 0x548   : > { %v2007_v46 = vpop.permute.xlu0 %2006 }
 0x549   : > { %v2009_v48 = vsel %vm4765_vm6, %v2005_v33, %v2007_v46  ;;  %v2015_v49 = vsel %vm4170_vm14, %v2007_v46, %v2001_v44  ;;  %vm4770_vm14 = vcmask 404480   ;;  %vm4776_vm6 = vcmask 31744  }
 0x54a   : > { %v2014_v50 = vsel %vm4178_vm0, %v2009_v48, %v2000_v47  ;;  %vm4775_vm0 = vcmask 1043456   ;;  %vm4779_vm13 = vmmov %vm4776_vm6 }
 0x54b   : > { %v2035_v51 = vcombine.low %v2014_v50, %v2015_v49  ;;  %v2019_v34 = vcombine.low %v2013_v35, %v2014_v50  ;;  %vm4780_vm2 = vmmov %vm4775_vm0 }
 0x54c   : > { %vm4781_vm1 = vmmov %vm4776_vm6 }
 0x54d   : > { %2036 = vrot.lane.b32.xlu0 %v2035_v51, %s4003_s29  ;;  %2020 = vrot.lane.b32.xlu1 %v2019_v34, %s4004_s10  ;;  %s4774_s29 = smov 92   ;;  %v275_v51 = vld [vmem:[%s4698_s4 + $0x1c] sm:$0xf] }
 0x551   : > { %2031 = vrot.lane.b32.xlu0 %v2013_v35, %s4001_s19  ;;  %2022 = vrot.lane.b32.xlu1 %v2015_v49, %s4004_s10  ;;  %s3935_s10 = scalar_lea.vmem %s3582_s12, 192 }
 0x552   : > { %p3936_p12 = scmp.ne.s32.totalorder %s3582_s12, %s3935_s10 }
 0x554   : > { %p3937_p13 = pnand %p3936_p12, %p4087_p5 }
 0x556   : > { %p3938_p0 = pneg %p3937_p13 }
 0x5bf   : > { %v2037_v36 = vpop.permute.xlu0 %2036  ;;  %v2021_v52 = vpop.permute.xlu1 %2020 }
 0x5c0   : > { %v2024_v40 = vrot.slane %v2021_v52, 4  ;;  %v2038_v53 = vrot.slane %v2037_v36, 4 }
 0x5c2   : > { %v2025_v41 = vsel %vm4766_vm8, %v2024_v40, %v2021_v52  ;;  %v2039_v56 = vsel %vm4769_vm12, %v2037_v36, %v2038_v53  ;;  %vm4782_vm8 = vmmov %vm4775_vm0 }
 0x5c3   : > { %2029 = vst.msk [vmem:[#allocation2] sm:$0xff] %vm4205_vm7, %v2025_v41  ;;  %v2032_v42 = vpop.permute.xlu0 %2031  ;;  %v2023_v54 = vpop.permute.xlu1 %2022  ;;  %vm4777_vm7 = vmmov %vm4775_vm0  ;;  %v276_v41 = vld [vmem:[%s4698_s4 + $0x20] sm:$0xf] }
 0x5c4   : > { %2034 = vst.msk [vmem:[#allocation2] sm:$0xf] %vm4767_vm9, %v2032_v42  ;;  %v2026_v55 = vsel %vm4768_vm11, %v2024_v40, %v2023_v54  ;;  %vm4783_vm9 = vcmask 1039360   ;;  %vm4785_vm12 = vmmov %vm4775_vm0 }
 0x5c5   : > { %2030 = vst.msk [vmem:[#allocation2 + $0x8] sm:$0xf] %vm4770_vm14, %v2026_v55  ;;  %vm4784_vm11 = vmmov %vm4783_vm9 }
 0x5c6   : > { %2041 = vst.msk [vmem:[#allocation2 + $0x8] sm:$0xf] %vm4771_vm15, %v2039_v56  ;;  %vm4786_vm14 = vmmov %vm4775_vm0 }
 0x5c7   : > { %vm4787_vm15 = vmmov %vm4781_vm1 }
 0x5cb   : > { %v4475_v57 = vld [vmem:[#allocation2] sm:$0xff] }
 0x5cc   : > { %2047 = vrot.lane.b32.xlu1 %v4475_v57, %s4007_s11  ;;  %v2359_v62 = vcombine.high %v4475_v57, %v4475_v57 }
 0x5cd   : > { %v2043_v60 = vld [vmem:[#allocation2 + $0x8] sm:$0xf] }
 0x5ce   : > { %2051 = vrot.lane.b32.xlu0 %v2043_v60, %s4007_s11  ;;  %v2356_v59 = vld [vmem:[#allocation2 + $0x8] sm:$0xf] }
 0x5cf   : > { %v2522_v61 = vld [vmem:[#allocation2 + $0x8] sm:$0xf] }
 0x5d0   : > { %2364 = vrot.lane.b32.xlu1 %v2356_v59, %s4772_s17  ;;  %v2688_v63 = vld [vmem:[#allocation2 + $0x8] sm:$0xf] }
 0x5d1   : > { %v2854_v0 = vld [vmem:[#allocation2 + $0x8] sm:$0xf] }
 0x5d2   : > { %2360 = vrot.lane.b32.xlu0 %v4475_v57, %s4772_s17  ;;  %v3020_v1 = vld [vmem:[#allocation2 + $0x8] sm:$0xf] }
 0x5d3   : > { %v3186_v2 = vld [vmem:[#allocation2 + $0x8] sm:$0xf] }
 0x5d4   : > { %2526 = vrot.lane.b32.xlu1 %v4475_v57, %s4001_s19  ;;  %v3352_v3 = vld [vmem:[#allocation2 + $0x8] sm:$0xf] }
 0x5d6   : > { %2530 = vrot.lane.b32.xlu0 %v2522_v61, %s4001_s19 }
 0x5d8   : > { %2049 = vrot.lane.b32.xlu1 %v2359_v62, %s4007_s11 }
 0x5da   : > { %2692 = vrot.lane.b32.xlu0 %v4475_v57, %s4773_s18 }
 0x5dc   : > { %2696 = vrot.lane.b32.xlu1 %v2688_v63, %s4773_s18 }
 0x5de   : > { %2362 = vrot.lane.b32.xlu0 %v2359_v62, %s4772_s17 }
 0x5e0   : > { %2858 = vrot.lane.b32.xlu1 %v4475_v57, %s4002_s20 }
 0x5e2   : > { %2862 = vrot.lane.b32.xlu0 %v2854_v0, %s4002_s20 }
 0x5e4   : > { %2528 = vrot.lane.b32.xlu1 %v2359_v62, %s4001_s19 }
 0x5e6   : > { %2694 = vrot.lane.b32.xlu0 %v2359_v62, %s4773_s18  ;;  %s3579_s18 = scalar_lea.hbm %s4700_s6, %s3867_s13 }
 0x5e8   : > { %3028 = vrot.lane.b32.xlu1 %v3020_v1, %s4774_s29 }
 0x5ea   : > { %3024 = vrot.lane.b32.xlu0 %v4475_v57, %s4774_s29 }
 0x5ec   : > { %2860 = vrot.lane.b32.xlu1 %v2359_v62, %s4002_s20  ;;  %s3939_s20 = sshll.u32 %s4013_s25, 4  ;;  %s3940_s20 = int_to_ptr.vmem [resolvable:$false] %s3939_s20 }
 0x5ed   : > { %p3942_p1 = scmp.lt.s32.totalorder %s3582_s12, %s3940_s20 }
 0x5ee   : > { %3026 = vrot.lane.b32.xlu0 %v2359_v62, %s4774_s29  ;;  %s4841_s29 = sand.u32 1, %s3987_s22  }
 0x5ef   : > { %s3567_s19 = scalar_lea.sflag [#allocation4], %s4841_s29 }
 0x5f0   : > { %3190 = vrot.lane.b32.xlu1 %v4475_v57, %s4011_s26 }
 0x5f2   : > { %3194 = vrot.lane.b32.xlu0 %v3186_v2, %s4011_s26 }
 0x5f4   : > { %3192 = vrot.lane.b32.xlu1 %v2359_v62, %s4011_s26 }
 0x5f6   : > { %3358 = vrot.lane.b32.xlu0 %v2359_v62, %s4012_s28 }
 0x5f8   : > { %3360 = vrot.lane.b32.xlu1 %v3352_v3, %s4012_s28 }
 0x5fa   : > { %3356 = vrot.lane.b32.xlu0 %v4475_v57, %s4012_s28 }
 0x5fc   : > { %3519 = vperm.xlu1 %3923, %v278_v5  }
 0x63e   : > { %v2048_v6 = vpop.permute.xlu1 %2047 }
 0x640   : > { %v2052_v9 = vpop.permute.xlu0 %2051 }
 0x641   : > { %3821 = vmatpush3.msk.msra.mxu1 %vm4775_vm0, %v2052_v9 }
 0x642   : > { %3823 = vmatmul.mubr.msk.f32.vlgmr.msra.gmra.mxu1 %vm4776_vm6, %v269_v8  ;;  %3825 = vmatprep.subr.mxu1 %v4005_v58  ;;  %v2365_v10 = vpop.permute.xlu1 %2364  ;;  %vm4788_vm6 = vmmov %vm4775_vm0 }
 0x643   : > { %3826 = vmatpush3.msk.msra.mxu1 %vm4777_vm7, %v2043_v60  ;;  %3827 = vmatprep.mubr.msk.f32.mxu1 %vm4778_vm4, %v4005_v58  ;;  %vm4789_vm7 = vmmov %vm4781_vm1 }
 0x644   : > { %v2361_v12 = vpop.permute.xlu0 %2360  ;;  %3830 = vmatprep.subr.mxu1 %v4005_v58 }
 0x646   : > { %3828 = vmatmul.mubr.msk.f32.vlgmr.msra.gmra.mxu1 %vm4779_vm13, %v268_v11  ;;  %v2527_v13 = vpop.permute.xlu1 %2526  ;;  %vm4790_vm13 = vmmov %vm4775_vm0 }
 0x647   : > { %3831 = vmatpush3.msk.msra.mxu1 %vm4780_vm2, %v2365_v10  ;;  %3832 = vmatprep.mubr.msk.f32.mxu1 %vm4778_vm4, %v4005_v58  ;;  %vm4791_vm2 = vcmask 1031168  }
 0x648   : > { %v2531_v16 = vpop.permute.xlu0 %2530  ;;  %3835 = vmatprep.subr.mxu1 %v4005_v58 }
 0x64a   : > { %3833 = vmatmul.mubr.msk.f32.vlgmr.msra.gmra.mxu1 %vm4781_vm1, %v270_v14  ;;  %v2050_v17 = vpop.permute.xlu1 %2049  ;;  %vm4792_vm1 = vmmov %vm4791_vm2 }
 0x64b   : > { %3836 = vmatpush3.msk.msra.mxu1 %vm4782_vm8, %v2531_v16  ;;  %v2053_v18 = vsel %vm4783_vm9, %v2048_v6, %v2050_v17  ;;  %v2054_v21 = vsel %vm4784_vm11, %v2050_v17, %v2052_v9  ;;  %3837 = vmatprep.mubr.msk.f32.mxu1 %vm4778_vm4, %v4005_v58  ;;  %vm4793_vm8 = vmmov %vm4789_vm7 }
 0x64c   : > { %v2693_v22 = vpop.permute.xlu0 %2692  ;;  %3691 = vmatprep.subr.msk.mxu0 %vm4785_vm12, %v2054_v21  ;;  %3840 = vmatprep.subr.mxu1 %v4005_v58  ;;  %vm4794_vm9 = vmmov %vm4775_vm0 }
 0x64d   : > { %3692 = vmatpush1.msk.msra.mxu0 %vm4786_vm14, %v2053_v18  ;;  %vm4795_vm11 = vmmov %vm4775_vm0 }
 0x64e   : > { %3693 = vmatmul.mubr.msk.f32.vlgmr.msra.gmra.mxu0 %vm4787_vm15, %v269_v8  ;;  %3696 = vmatprep.subr.msk.mxu0 %vm4775_vm0, %v2359_v62  ;;  %v2697_v25 = vpop.permute.xlu1 %2696  ;;  %vm4796_vm12 = vmmov %vm4789_vm7 }
 0x64f   : > { %3697 = vmatpush1.msk.msra.mxu0 %vm4788_vm6, %v4475_v57  ;;  %3838 = vmatmul.mubr.msk.f32.vlgmr.msra.gmra.mxu1 %vm4789_vm7, %v271_v24  ;;  %vm4797_vm14 = vmmov %vm4775_vm0  ;;  %vm4799_vm0 = vcmask 900096  }
 0x650   : > { %3841 = vmatpush3.msk.msra.mxu1 %vm4790_vm13, %v2697_v25  ;;  %v2363_v26 = vpop.permute.xlu0 %2362  ;;  %2278 = vmatprep.mubr.f32.mxu0 %v4005_v58  ;;  %vm4798_vm15 = vmmov %vm4789_vm7 }
 0x651   : > { %v2366_v27 = vsel %vm4791_vm2, %v2361_v12, %v2363_v26  ;;  %v2367_v4 = vsel %vm4792_vm1, %v2363_v26, %v2365_v10  ;;  %3842 = vmatprep.mubr.msk.f32.mxu1 %vm4778_vm4, %v4005_v58  ;;  %3845 = vmatprep.subr.mxu1 %v4005_v58  ;;  %vm4800_vm6 = vmmov %vm4799_vm0  ;;  %vm4803_vm2 = vcmask 891904  }
 0x652   : > { %3698 = vmatmul.mubr.msk.f32.vlgmr.msra.gmra.mxu0 %vm4793_vm8, %v268_v11  ;;  %3701 = vmatprep.subr.msk.mxu0 %vm4794_vm9, %v2367_v4  ;;  %v2859_v28 = vpop.permute.xlu1 %2858  ;;  %vm4801_vm7 = vmmov %vm4794_vm9 }
 0x653   : > { %3702 = vmatpush1.msk.msra.mxu0 %vm4795_vm11, %v2366_v27  ;;  %2441 = vmatprep.mubr.f32.mxu0 %v4005_v58  ;;  %vm4802_vm13 = vmmov %vm4793_vm8 }
 0x654   : > { %v2863_v29 = vpop.permute.xlu0 %2862  ;;  %3843 = vmatmul.mubr.msk.f32.vlgmr.msra.gmra.mxu1 %vm4796_vm12, %v272_v15  ;;  %vm4804_vm1 = vmmov %vm4803_vm2 }
 0x655   : > { %3846 = vmatpush3.msk.msra.mxu1 %vm4797_vm14, %v2863_v29  ;;  %3847 = vmatprep.mubr.msk.f32.mxu1 %vm4778_vm4, %v4005_v58  ;;  %vm4805_vm8 = vmmov %vm4801_vm7 }
 0x656   : > { %3703 = vmatmul.mubr.msk.f32.vlgmr.msra.gmra.mxu0 %vm4798_vm15, %v270_v14  ;;  %v2529_v32 = vpop.permute.xlu1 %2528  ;;  %3850 = vmatprep.subr.mxu1 %v4005_v58  ;;  %vm4806_vm9 = vmmov %vm4796_vm12 }
 0x657   : > { %v2532_v7 = vsel %vm4799_vm0, %v2527_v13, %v2529_v32  ;;  %v2533_v33 = vsel %vm4800_vm6, %v2529_v32, %v2531_v16  ;;  %2607 = vmatprep.mubr.f32.mxu0 %v4005_v58  ;;  %vm4807_vm11 = vmmov %vm4801_vm7  ;;  %vm4812_vm6 = vcmask 883712  }
 0x658   : > { %v2695_v20 = vpop.permute.xlu0 %2694  ;;  %3706 = vmatprep.subr.msk.mxu0 %vm4801_vm7, %v2533_v33  ;;  %3848 = vmatmul.mubr.msk.f32.vlgmr.msra.gmra.mxu1 %vm4802_vm13, %v273_v30  ;;  %vm4808_vm12 = vmmov %vm4801_vm7 }
 0x659   : > { %v2698_v19 = vsel %vm4803_vm2, %v2693_v22, %v2695_v20  ;;  %v2699_v23 = vsel %vm4804_vm1, %v2695_v20, %v2697_v25  ;;  %3707 = vmatpush1.msk.msra.mxu0 %vm4805_vm8, %v2532_v7  ;;  %3852 = vmatprep.mubr.msk.f32.mxu1 %vm4778_vm4, %v4005_v58  ;;  %vm4809_vm14 = vmmov %vm4801_vm7  ;;  %vm4815_vm2 = vcmask 752640  }
 0x65a   : > { %3708 = vmatmul.mubr.msk.f32.vlgmr.msra.gmra.mxu0 %vm4806_vm9, %v271_v24  ;;  %3711 = vmatprep.subr.msk.mxu0 %vm4807_vm11, %v2699_v23  ;;  %v3029_v43 = vpop.permute.xlu1 %3028  ;;  %vm4810_vm15 = vmmov %vm4806_vm9 }
 0x65b   : > { %3712 = vmatpush1.msk.msra.mxu0 %vm4808_vm12, %v2698_v19  ;;  %3851 = vmatpush3.msk.msra.mxu1 %vm4809_vm14, %v3029_v43  ;;  %vm4811_vm0 = vmmov %vm4806_vm9 }
 0x65c   : > { %v3025_v44 = vpop.permute.xlu0 %3024  ;;  %2773 = vmatprep.mubr.f32.mxu0 %v4005_v58  ;;  %3853 = vmatmul.mubr.msk.f32.vlgmr.msra.gmra.mxu1 %vm4810_vm15, %v274_v39  ;;  %vm4813_vm7 = vmmov %vm4812_vm6 }
 0x65d   : > { %3855 = vmatprep.subr.mxu1 %v4005_v58  ;;  %3857 = vmatprep.mubr.msk.f32.mxu1 %vm4778_vm4, %v4005_v58  ;;  %vm4814_vm13 = vmmov %vm4805_vm8 }
 0x65e   : > { %3713 = vmatmul.mubr.msk.f32.vlgmr.msra.gmra.mxu0 %vm4811_vm0, %v272_v15  ;;  %v2861_v45 = vpop.permute.xlu1 %2860  ;;  %vm4816_vm1 = vmmov %vm4815_vm2 }
 0x65f   : > { %v2864_v46 = vsel %vm4812_vm6, %v2859_v28, %v2861_v45  ;;  %v2865_v47 = vsel %vm4813_vm7, %v2861_v45, %v2863_v29  ;;  %2939 = vmatprep.mubr.f32.mxu0 %v4005_v58  ;;  %vm4817_vm9 = vmmov %vm4811_vm0  ;;  %vm4822_vm6 = vcmask 744448  }
 0x660   : > { %v3027_v48 = vpop.permute.xlu0 %3026  ;;  %3716 = vmatprep.subr.msk.mxu0 %vm4814_vm13, %v2865_v47  ;;  %vm4818_vm11 = vmmov %vm4805_vm8 }
 0x661   : > { %v3030_v49 = vsel %vm4815_vm2, %v3025_v44, %v3027_v48  ;;  %v3031_v35 = vsel %vm4816_vm1, %v3027_v48, %v3029_v43  ;;  %3717 = vmatpush1.msk.msra.mxu0 %vm4805_vm8, %v2864_v46  ;;  %vm4819_vm12 = vmmov %vm4805_vm8 }
 0x662   : > { %3718 = vmatmul.mubr.msk.f32.vlgmr.msra.gmra.mxu0 %vm4817_vm9, %v273_v30  ;;  %3721 = vmatprep.subr.msk.mxu0 %vm4818_vm11, %v3031_v35  ;;  %v3191_v50 = vpop.permute.xlu1 %3190  ;;  %vm4820_vm14 = vmmov %vm4805_vm8 }
 0x663   : > { %3722 = vmatpush1.msk.msra.mxu0 %vm4819_vm12, %v3030_v49  ;;  %3105 = vmatprep.mubr.f32.mxu0 %v4005_v58  ;;  %vm4821_vm15 = vmmov %vm4811_vm0 }
 0x664   : > { %v3195_v34 = vpop.permute.xlu0 %3194  ;;  %vm4823_vm7 = vmmov %vm4822_vm6 }
 0x665   : > { %3856 = vmatpush3.msk.msra.mxu1 %vm4820_vm14, %v3195_v34  ;;  %vm4824_vm13 = vmmov %vm4805_vm8 }
 0x666   : > { %3723 = vmatmul.mubr.msk.f32.vlgmr.msra.gmra.mxu0 %vm4821_vm15, %v274_v39  ;;  %3858 = vmatmul.mubr.msk.f32.vlgmr.msra.gmra.mxu1 %vm4811_vm0, %v275_v51  ;;  %v3193_v36 = vpop.permute.xlu1 %3192  ;;  %vm4825_vm2 = vmmov %vm4805_vm8  ;;  %vm4827_vm8 = vcmask 736256  }
 0x667   : > { %v3196_v52 = vsel %vm4822_vm6, %v3191_v50, %v3193_v36  ;;  %v3197_v40 = vsel %vm4823_vm7, %v3193_v36, %v3195_v34  ;;  %3271 = vmatprep.mubr.f32.mxu0 %v4005_v58  ;;  %3860 = vmatprep.subr.mxu1 %v4005_v58  ;;  %vm4826_vm1 = vmmov %vm4811_vm0  ;;  %vm4836_vm7 = vcmask 257024  }
 0x668   : > { %v3359_v53 = vpop.permute.xlu0 %3358  ;;  %3726 = vmatprep.subr.msk.mxu0 %vm4824_vm13, %v3197_v40  ;;  %3862 = vmatprep.mubr.msk.f32.mxu1 %vm4778_vm4, %v4005_v58  ;;  %vm4828_vm9 = vmmov %vm4825_vm2 }
 0x669   : > { %3727 = vmatpush1.msk.msra.mxu0 %vm4825_vm2, %v3196_v52  ;;  %vm4829_vm11 = vmmov %vm4825_vm2 }
 0x66a   : > { %3728 = vmatmul.mubr.msk.f32.vlgmr.msra.gmra.mxu0 %vm4826_vm1, %v275_v51  ;;  %v3361_v42 = vpop.permute.xlu1 %3360  ;;  %vm4830_vm12 = vmmov %vm4811_vm0 }
 0x66b   : > { %v3363_v54 = vsel %vm4827_vm8, %v3359_v53, %v3361_v42  ;;  %3861 = vmatpush3.msk.msra.mxu1 %vm4828_vm9, %v3361_v42  ;;  %3437 = vmatprep.mubr.f32.mxu0 %v4005_v58  ;;  %vm4831_vm4 = vmmov %vm4827_vm8 }
 0x66c   : > { %v3357_v55 = vpop.permute.xlu0 %3356  ;;  %3731 = vmatprep.subr.msk.mxu0 %vm4829_vm11, %v3363_v54  ;;  %3863 = vmatmul.mubr.msk.f32.vlgmr.msra.gmra.mxu1 %vm4830_vm12, %v276_v41  ;;  %vm4832_vm14 = vmmov %vm4825_vm2 }
 0x66d   : > { %v3362_v56 = vsel %vm4831_vm4, %v3357_v55, %v3359_v53  ;;  %vm4833_vm15 = vmmov %vm4811_vm0 }
 0x66e   : > { %3732 = vmatpush1.msk.msra.mxu0 %vm4832_vm14, %v3362_v56  ;;  %vm4834_vm0 = vmmov %vm4825_vm2 }
 0x66f   : > { %3733 = vmatmul.mubr.msk.f32.vlgmr.msra.gmra.mxu0 %vm4833_vm15, %v276_v41  ;;  %vm4835_vm6 = vmmov %vm4834_vm0 }
 0x670   : > { %vm4837_vm13 = vmmov %vm4834_vm0 }
 0x671   : > { %vm4838_vm2 = vmmov %vm4834_vm0 }
 0x672   : > { %vm4839_vm1 = vmmov %vm4836_vm7 }
 0x677   : > { %v3520_v54 = vpop.permute.xlu1 %3519 }
 0x702   : > { %v2201_v57 = vpop.f32.mrf.mxu1 }
 0x704   : > { %v3824_v60 = vpop.f32.mrf.mxu1 }
 0x706   : > { %v2351_v59 = vpop.f32.mrf.mxu1 }
 0x707   : > { %v2352_v8 = vadd.f32 %v2351_v59, %v2201_v57 }
 0x708   : > { %v3829_v61 = vpop.f32.mrf.mxu1 }
 0x70a   : > { %v2514_v62 = vpop.f32.mrf.mxu1 }
 0x70b   : > { %v2520_v13 = vadd.f32 %v2514_v62, %v2352_v8 }
 0x70c   : > { %v3834_v63 = vpop.f32.mrf.mxu1 }
 0x70e   : > { %v2130_v0 = vpop.f32.mrf.mxu0 }
 0x70f   : > { %v2680_v1 = vpop.f32.mrf.mxu1 }
 0x710   : > { %v2132_v58 = vpop.f32.mrf.mxu0  ;;  %v2686_v21 = vadd.f32 %v2680_v1, %v2520_v13 }
 0x711   : > { %v3839_v2 = vpop.f32.mrf.mxu1 }
 0x712   : > { %v2280_v3 = vpop.f32.mrf.mxu0 }
 0x713   : > { %v2281_v26 = vadd.f32 %v2280_v3, %v2130_v0 }
 0x714   : > { %v2282_v5 = vpop.f32.mrf.mxu0  ;;  %v2846_v6 = vpop.f32.mrf.mxu1 }
 0x715   : > { %v2852_v27 = vadd.f32 %v2846_v6, %v2686_v21  ;;  %v2283_v15 = vadd.f32 %v2282_v5, %v2132_v58 }
 0x716   : > { %v2443_v9 = vpop.f32.mrf.mxu0  ;;  %v3844_v10 = vpop.f32.mrf.mxu1 }
 0x717   : > { %v2518_v28 = vadd.f32 %v2443_v9, %v2281_v26 }
 0x718   : > { %v2445_v11 = vpop.f32.mrf.mxu0  ;;  %v3012_v12 = vpop.f32.mrf.mxu1 }
 0x719   : > { %v2519_v30 = vadd.f32 %v2445_v11, %v2283_v15  ;;  %v3018_v7 = vadd.f32 %v3012_v12, %v2852_v27 }
 0x71a   : > { %v2609_v14 = vpop.f32.mrf.mxu0  ;;  %v3849_v16 = vpop.f32.mrf.mxu1 }
 0x71b   : > { %v2684_v32 = vadd.f32 %v2609_v14, %v2518_v28 }
 0x71c   : > { %v2611_v17 = vpop.f32.mrf.mxu0  ;;  %v3178_v18 = vpop.f32.mrf.mxu1 }
 0x71d   : > { %v2685_v19 = vadd.f32 %v2611_v17, %v2519_v30  ;;  %v3184_v45 = vadd.f32 %v3178_v18, %v3018_v7 }
 0x71e   : > { %v2775_v22 = vpop.f32.mrf.mxu0  ;;  %v3854_v24 = vpop.f32.mrf.mxu1 }
 0x71f   : > { %v2850_v23 = vadd.f32 %v2775_v22, %v2684_v32  ;;  %v3934_v32 = vld [vmem:[%s4105_s15] sm:$0xff] }
 0x720   : > { %v2777_v25 = vpop.f32.mrf.mxu0 }
 0x721   : > { %v2851_v44 = vadd.f32 %v2777_v25, %v2685_v19 }
 0x722   : > { %v2941_v4 = vpop.f32.mrf.mxu0 }
 0x723   : > { %v3016_v46 = vadd.f32 %v2941_v4, %v2850_v23 }
 0x724   : > { %v2943_v29 = vpop.f32.mrf.mxu0 }
 0x725   : > { %v3017_v48 = vadd.f32 %v2943_v29, %v2851_v44  ;;  %v3933_v29 = vld [vmem:[%s4105_s15 + $0x8] sm:$0xf]  ;;  %s3941_s15 = scalar_lea.vmem %s3940_s20, 384 }
 0x726   : > { %v3107_v33 = vpop.f32.mrf.mxu0  ;;  %v3344_v20 = vpop.f32.mrf.mxu1  ;;  %p3943_p2 = scmp.lt.s32.totalorder %s3941_s15, %s3935_s10 }
 0x727   : > { %v3182_v49 = vadd.f32 %v3107_v33, %v3016_v46  ;;  %v3350_v35 = vadd.f32 %v3344_v20, %v3184_v45 }
 0x728   : > { %v3109_v39 = vpop.f32.mrf.mxu0  ;;  %v3859_v43 = vpop.f32.mrf.mxu1  ;;  %p3944_p3 = por %p3943_p2, %p3942_p1 }
 0x729   : > { %v3183_v34 = vadd.f32 %v3109_v39, %v3017_v48 }
 0x72a   : > { %v3273_v47 = vpop.f32.mrf.mxu0  ;;  %p3945_p4 = pnand %p3944_p3, %p3938_p0 }
 0x72b   : > { %v3348_v36 = vadd.f32 %v3273_v47, %v3182_v49 }
 0x72c   : > { %v3275_v50 = vpop.f32.mrf.mxu0  ;;  %v3510_v51 = vpop.f32.mrf.mxu1 }
 0x72d   : > { %v3516_v52 = vadd.f32 %v3510_v51, %v3350_v35  ;;  %v3349_v41 = vadd.f32 %v3275_v50, %v3183_v34 }
 0x72e   : > { %v3864_v40 = vpop.f32.mrf.mxu1 }
 0x72f   : > { %v3439_v53 = vpop.f32.mrf.mxu0  ;;  %v3524_v56 = vadd.f32 %v3520_v54, %v3516_v52 }
 0x730   : > { %v3514_v42 = vadd.f32 %v3439_v53, %v3348_v36 }
 0x731   : > { %v3441_v55 = vpop.f32.mrf.mxu0  ;;  %v3527_v63 = vsel %vm4407_vm3, %v3524_v56, 0.0 }
 0x732   : > { %v3522_v57 = vadd.f32 %v3520_v54, %v3514_v42  ;;  %v3515_v60 = vadd.f32 %v3441_v55, %v3349_v41  ;;  %v3531_v2 = vsel %vm4836_vm7, %v3527_v63, 0.0 }
 0x734   : > { %v3525_v59 = vsel %vm4399_vm10, %v3522_v57, 0.0  ;;  %v3523_v61 = vadd.f32 %v3520_v54, %v3515_v60 }
 0x735   : > { %v3528_v0 = vsel %vm4834_vm0, %v3525_v59, 0.0 }
 0x736   : > { %v3526_v62 = vsel %vm4403_vm5, %v3523_v61, 0.0 }
 0x737   : > { %v3529_v1 = vsel %vm4835_vm6, %v3526_v62, 0.0 }
 0x738   : > { %v3530_v58 = vadd.f32 %v3529_v1, %v3528_v0 }
 0x73a   : > { %v3532_v3 = vadd.f32 %v3531_v2, %v3530_v58 }
 0x73c   : > { %3533 = vadd.xlane.f32.xlu0 %v3532_v3 }
 0x7c5   : > { %v3534_v5 = vpop.xlane.xlu0 %3533 }
 0x7c6   : > { %v3535_v6 = vmul.f32 0.00390625, %v3534_v5 }
 0x7c8   : > { %v3536_v8 = vsub.f32 %v3522_v57, %v3535_v6  ;;  %v3537_v9 = vsub.f32 %v3523_v61, %v3535_v6  ;;  %v3538_v10 = vsub.f32 %v3524_v56, %v3535_v6 }
 0x7ca   : > { %v3539_v11 = vsel %vm4399_vm10, %v3536_v8, 0.0  ;;  %v3540_v12 = vsel %vm4403_vm5, %v3537_v9, 0.0  ;;  %v3541_v13 = vsel %vm4407_vm3, %v3538_v10, 0.0  ;;  %vm4840_vm3 = vmmov %vm4839_vm1 }
 0x7cb   : > { %v3542_v14 = vmul.f32 %v3539_v11, %v3539_v11  ;;  %v3543_v16 = vmul.f32 %v3540_v12, %v3540_v12  ;;  %v3544_v17 = vmul.f32 %v3541_v13, %v3541_v13 }
 0x7cd   : > { %v3545_v18 = vsel %vm4837_vm13, %v3542_v14, 0.0  ;;  %v3546_v21 = vsel %vm4838_vm2, %v3543_v16, 0.0  ;;  %v3548_v31 = vsel %vm4839_vm1, %v3544_v17, 0.0 }
 0x7ce   : > { %v3547_v22 = vadd.f32 %v3546_v21, %v3545_v18 }
 0x7d0   : > { %v3549_v24 = vadd.f32 %v3548_v31, %v3547_v22 }
 0x7d2   : > { %3550 = vadd.xlane.f32.xlu1 %v3549_v24 }
 0x85b   : > { %v3551_v37 = vpop.xlane.xlu1 %3550 }
 0x85c   : > { %v3552_v38 = vmul.f32 0.00390625, %v3551_v37 }
 0x85e   : > { %v3553_v25 = vadd.f32 1e-05, %v3552_v38 }
 0x860   : > { %3931 = vrsqrt.f32 %v3553_v25 }
 0x86d   : > { %v3932_v26 = vpop.eup %3931 }
 0x86e   : > { %v3555_v27 = vmul.f32 %v3932_v26, %v3536_v8  ;;  %v3556_v4 = vmul.f32 %v3932_v26, %v3537_v9  ;;  %v3557_v15 = vmul.f32 %v3932_v26, %v3538_v10 }
 0x870   : > { %v3560_v28 = vcombine.low %v3555_v27, %v3556_v4  ;;  %v3563_v30 = vadd.f32 %v3933_v29, %v3557_v15 }
 0x872   : > { %v3562_v7 = vadd.f32 %v3934_v32, %v3560_v28  ;;  %3565 = vst.msk [vmem:[%s4107_s16 + $0x8] sm:$0xf] %vm4840_vm3, %v3563_v30 }
 0x874   : > { %3564 = vst [vmem:[%s4107_s16] sm:$0xff] %v3562_v7 }
 0x875   : > { %3948 = shalt.err (!%p3945_p4)
}
 0x876   : > { %s3949_s11 = scalar_lea.hbm %s3579_s18, 192  ;;  %s3953_s28 = scalar_lea.hbm %s4700_s6, 384 }
 0x877   : > { %p3950_p7 = scmp.ne.s32.totalorder %s3579_s18, %s3949_s11  ;;  %p3954_p10 = scmp.lt.s32.totalorder %s3579_s18, %s4700_s6 }
 0x878   : > { %p3955_p11 = scmp.lt.s32.totalorder %s3953_s28, %s3949_s11 }
 0x879   : > { %p3951_p8 = pnand %p3950_p7, %p4087_p5 }
 0x87a   : > { %p3956_p12 = por %p3955_p11, %p3954_p10 }
 0x87b   : > { %p3952_p9 = pneg %p3951_p8 }
 0x87d   : > { %p3957_p13 = pnand %p3956_p12, %p3952_p9 }
 0x87f   : > { %3960 = shalt.err (!%p3957_p13)
}
 0x880   : > { %3868 = dma.vmem_to_hbm [thread:$0]  (%p4087_p5), %s3582_s12, 192, %s3579_s18, %s3567_s19  }
 0x881 PF: > { %p3874_p0 = scmp.ge.s32.totalorder %s3995_s24, 2  ;;  %s3593_s14 = sand.u32 1, %s3983_s21  }
 0x882   : > { %s3594_s17 = scalar_lea.sflag [#allocation4], %s3593_s14 }
 0x883   : > { %p3871_p1 = pnand %p3874_p0, %p4091_p6 }
 0x885   : > { %p3872_p2 = pneg %p3871_p1 }
 0x887   : > { %3978 = dma.done.wait (%p3872_p2), %s3594_s17, 192  }
 0x888   : > { %3980 = vsyncadd (%p3872_p2), %s3594_s17, 4294967104  ;;  %p16_p3 = scmp.ge.s32.totalorder %s4074_s27, 4   ;;  %s4842_s21 = smov %s3987_s22 }
 0x889   : > { %s4843_s22 = smov %s3991_s23  ;;  %s4844_s23 = smov %s4085_s30 }
 0x88a   : > { %s4845_s24 = smov %s4074_s27  ;;  %18 = sbr.rel (!%p16_p3) target bundleno = 3 (0x3), region = 83 }
 0x88f   :  { %3599 = vsyncpa [#allocation4], 1 }
 0x890   :  { %3601 = vsyncpa [#allocation4 + $0x1], 1 }

</bundles_post_ra>
